<compile_context>
chip_gen: v7x
topology: tpu7x:2x2x1
jax: 0.10.0
libtpu: 0.0.40
codegen_flags: <defaults>
</compile_context>

<pallas_src>
import functools
import math

import jax
import jax.numpy as jnp
import numpy as np
from jax import lax
from jax.experimental import pallas as pl
from jax.experimental.pallas import tpu as pltpu


# --------------------------------------------------------------------------
# Kernel 1: RMSNorm + QKV projection + RoPE (chunked over S, per head)
# --------------------------------------------------------------------------
def qkv_rope_kernel(x_ref, cos_ref, sin_ref, wq_ref, wk_ref, wv_ref, ln1_ref,
                    q_out, k_out, v_out, xn_sc, *, head_dim, eps):
    h = pl.program_id(2)
    half = head_dim // 2

    # RMSNorm for this s-tile, computed once (head axis is innermost/arbitrary).
    @pl.when(h == 0)
    def _():
        x = x_ref[0]                                             # (TS, H) f32
        var = jnp.mean(x * x, axis=-1, keepdims=True)
        xn_sc[...] = (x * lax.rsqrt(var + eps) * ln1_ref[...]).astype(jnp.bfloat16)

    xn = xn_sc[...]                                              # (TS, H) bf16
    cos = cos_ref[...]                                           # (TS, hd) f32
    sin = sin_ref[...]                                           # sign-folded sin

    q = jnp.dot(xn, wq_ref[...], preferred_element_type=jnp.float32)
    q = q * (1.0 / math.sqrt(head_dim))                          # fold 1/sqrt(hd)
    q = q * cos + pltpu.roll(q, half, axis=1) * sin              # RoPE (one roll)

    k = jnp.dot(xn, wk_ref[...], preferred_element_type=jnp.float32)
    k = k * cos + pltpu.roll(k, half, axis=1) * sin

    v = jnp.dot(xn, wv_ref[...], preferred_element_type=jnp.float32)

    q_out[0, 0] = q.astype(jnp.bfloat16)
    k_out[0, 0] = k.astype(jnp.bfloat16)
    v_out[0, 0] = v.astype(jnp.bfloat16)


# --------------------------------------------------------------------------
# Kernel 2: flash attention (causal, online softmax) + per-head o_proj
# --------------------------------------------------------------------------
def flash_oproj_kernel(q_ref, k_ref, v_ref, wo_ref, out_ref,
                       m_sc, l_sc, acc_sc, *, q_tile, kv_tile):
    qi = pl.program_id(1)
    h = pl.program_id(2)
    kv = pl.program_id(3)
    last_kv = ((qi + 1) * q_tile - 1) // kv_tile                 # causal frontier

    # First step for this (b, qi) output block: zero the accumulator block.
    @pl.when(jnp.logical_and(h == 0, kv == 0))
    def _():
        out_ref[...] = jnp.zeros_like(out_ref)

    # Per-head online-softmax state reset.
    @pl.when(kv == 0)
    def _():
        m_sc[...] = jnp.full(m_sc.shape, -1e30, dtype=jnp.float32)
        l_sc[...] = jnp.zeros_like(l_sc)
        acc_sc[...] = jnp.zeros_like(acc_sc)

    # Skip tiles that are fully above the causal diagonal.
    @pl.when(kv <= last_kv)
    def _():
        q = q_ref[0, 0]                                          # (TQ, hd) bf16
        k = k_ref[0, 0]                                          # (TK, hd) bf16
        v = v_ref[0, 0]
        s = lax.dot_general(q, k, (((1,), (1,)), ((), ())),
                            preferred_element_type=jnp.float32)  # (TQ, TK)

        rows = qi * q_tile + lax.broadcasted_iota(jnp.int32, (q_tile, kv_tile), 0)
        cols = kv * kv_tile + lax.broadcasted_iota(jnp.int32, (q_tile, kv_tile), 1)
        s = jnp.where(cols <= rows, s, -1e30)

        m_prev = m_sc[...]
        m_new = jnp.maximum(m_prev, jnp.max(s, axis=-1, keepdims=True))
        alpha = jnp.exp(m_prev - m_new)
        p = jnp.exp(s - m_new)
        l_sc[...] = alpha * l_sc[...] + jnp.sum(p, axis=-1, keepdims=True)
        acc_sc[...] = alpha * acc_sc[...] + jnp.dot(
            p.astype(jnp.bfloat16), v, preferred_element_type=jnp.float32)
        m_sc[...] = m_new

    # Last needed KV tile for this q tile: finalize head and fold o_proj in.
    @pl.when(kv == last_kv)
    def _():
        attn = acc_sc[...] * pl.reciprocal(l_sc[...])            # exact divide
        contrib = jnp.dot(attn.astype(jnp.bfloat16), wo_ref[...],
                          preferred_element_type=jnp.float32)    # (TQ, H)
        out_ref[0] += contrib


# --------------------------------------------------------------------------
# Kernel 3: residual + post-LN + SwiGLU MLP (tiled over I) + residual
# --------------------------------------------------------------------------
def mlp_resid_kernel(x_ref, attn_ref, ln2_ref, wg_ref, wu_ref, wd_ref,
                     out_ref, h1n_sc, *, eps):
    it = pl.program_id(2)

    @pl.when(it == 0)
    def _():
        h1 = x_ref[0] + attn_ref[0]                              # (TQ, H) f32
        var = jnp.mean(h1 * h1, axis=-1, keepdims=True)
        h1n_sc[...] = (h1 * lax.rsqrt(var + eps) * ln2_ref[...]).astype(jnp.bfloat16)
        out_ref[0] = h1                                          # start at residual

    h1n = h1n_sc[...]                                            # (TQ, H) bf16
    g = jnp.dot(h1n, wg_ref[...], preferred_element_type=jnp.float32)
    u = jnp.dot(h1n, wu_ref[...], preferred_element_type=jnp.float32)
    act = (g * jax.nn.sigmoid(g) * u).astype(jnp.bfloat16)       # SiLU(g)*u in f32
    out_ref[0] += jnp.dot(act, wd_ref[...], preferred_element_type=jnp.float32)


# --------------------------------------------------------------------------
# Wrapper
# --------------------------------------------------------------------------
def llama_decoder_layer(x, cos, sin_signed, params, *, num_heads, eps,
                        q_tile=128, kv_tile=128, s_tile=128, i_tile=256):
    B, S, H = x.shape
    hd = H // num_heads
    assert H == num_heads * hd
    I = params["wg_t"].shape[1]

    q_tile = min(q_tile, S)
    kv_tile = min(kv_tile, S)
    s_tile = min(s_tile, S)
    i_tile = min(i_tile, I)
    assert S % q_tile == 0 and S % kv_tile == 0 and S % s_tile == 0
    assert I % i_tile == 0
    # bf16 sublane packing: row-tiles must be multiples of 16.
    assert q_tile % 16 == 0 and kv_tile % 16 == 0 and s_tile % 16 == 0

    nq, nkv, ns, ni = S // q_tile, S // kv_tile, S // s_tile, I // i_tile

    try:
        vmem_limit = int(pltpu.get_tpu_info().vmem_capacity_bytes * 3 // 4)
    except Exception:  # pragma: no cover
        vmem_limit = 48 * 1024 * 1024

    # ---------------- kernel 1: RMSNorm + QKV + RoPE -------------------
    qkv = functools.partial(qkv_rope_kernel, head_dim=hd, eps=eps)
    q_all, k_all, v_all = pl.pallas_call(
        qkv,
        out_shape=(jax.ShapeDtypeStruct((B, num_heads, S, hd), jnp.bfloat16),
                   jax.ShapeDtypeStruct((B, num_heads, S, hd), jnp.bfloat16),
                   jax.ShapeDtypeStruct((B, num_heads, S, hd), jnp.bfloat16)),
        grid_spec=pltpu.PrefetchScalarGridSpec(
            num_scalar_prefetch=0,
            grid=(B, ns, num_heads),
            in_specs=[
                pl.BlockSpec((1, s_tile, H), lambda b, s, h: (b, s, 0)),   # x tile
                pl.BlockSpec((s_tile, hd), lambda b, s, h: (s, 0)),        # cos
                pl.BlockSpec((s_tile, hd), lambda b, s, h: (s, 0)),        # sin*sign
                pl.BlockSpec((H, hd), lambda b, s, h: (0, h)),             # Wq^T head
                pl.BlockSpec((H, hd), lambda b, s, h: (0, h)),             # Wk^T head
                pl.BlockSpec((H, hd), lambda b, s, h: (0, h)),             # Wv^T head
                pl.BlockSpec((1, H), lambda b, s, h: (0, 0)),              # ln1
            ],
            out_specs=[
                pl.BlockSpec((1, 1, s_tile, hd), lambda b, s, h: (b, h, s, 0)),
                pl.BlockSpec((1, 1, s_tile, hd), lambda b, s, h: (b, h, s, 0)),
                pl.BlockSpec((1, 1, s_tile, hd), lambda b, s, h: (b, h, s, 0)),
            ],
            scratch_shapes=[pltpu.VMEM((s_tile, H), jnp.bfloat16)],
        ),
        compiler_params=pltpu.CompilerParams(
            dimension_semantics=("parallel", "parallel", "arbitrary"),
            vmem_limit_bytes=vmem_limit),
    )(x, cos, sin_signed,
      params["wq_t"], params["wk_t"], params["wv_t"], params["ln1"])

    # ---------------- kernel 2: flash attention + o_proj ---------------
    def kv_map(b, qi, h, kv):
        # Clamp to the last KV tile that intersects the causal frontier so
        # skipped iterations re-use the already-fetched block (no DMA).
        last = ((qi + 1) * q_tile - 1) // kv_tile
        return (b, h, jnp.minimum(kv, last), 0)

    attn_fn = functools.partial(flash_oproj_kernel, q_tile=q_tile, kv_tile=kv_tile)
    attn_out = pl.pallas_call(
        attn_fn,
        out_shape=jax.ShapeDtypeStruct((B, S, H), jnp.float32),
        grid_spec=pltpu.PrefetchScalarGridSpec(
            num_scalar_prefetch=0,
            grid=(B, nq, num_heads, nkv),
            in_specs=[
                pl.BlockSpec((1, 1, q_tile, hd), lambda b, qi, h, kv: (b, h, qi, 0)),
                pl.BlockSpec((1, 1, kv_tile, hd), kv_map),                 # K
                pl.BlockSpec((1, 1, kv_tile, hd), kv_map),                 # V
                pl.BlockSpec((hd, H), lambda b, qi, h, kv: (h, 0)),        # Wo^T head
            ],
            out_specs=pl.BlockSpec((1, q_tile, H), lambda b, qi, h, kv: (b, qi, 0)),
            scratch_shapes=[
                pltpu.VMEM((q_tile, 1), jnp.float32),      # m (running max)
                pltpu.VMEM((q_tile, 1), jnp.float32),      # l (running denom)
                pltpu.VMEM((q_tile, hd), jnp.float32),     # acc (running PV)
            ],
        ),
        compiler_params=pltpu.CompilerParams(
            dimension_semantics=("parallel", "parallel", "arbitrary", "arbitrary"),
            vmem_limit_bytes=vmem_limit),
    )(q_all, k_all, v_all, params["wo_t"])

    # ---------------- kernel 3: residual + LN + MLP (I-tiled) ----------
    mlp_fn = functools.partial(mlp_resid_kernel, eps=eps)
    out = pl.pallas_call(
        mlp_fn,
        out_shape=jax.ShapeDtypeStruct((B, S, H), jnp.float32),
        grid_spec=pltpu.PrefetchScalarGridSpec(
            num_scalar_prefetch=0,
            grid=(B, nq, ni),
            in_specs=[
                pl.BlockSpec((1, q_tile, H), lambda b, q, i: (b, q, 0)),   # x (residual)
                pl.BlockSpec((1, q_tile, H), lambda b, q, i: (b, q, 0)),   # attn out
                pl.BlockSpec((1, H), lambda b, q, i: (0, 0)),              # ln2
                pl.BlockSpec((H, i_tile), lambda b, q, i: (0, i)),         # Wgate^T chunk
                pl.BlockSpec((H, i_tile), lambda b, q, i: (0, i)),         # Wup^T chunk
                pl.BlockSpec((i_tile, H), lambda b, q, i: (i, 0)),         # Wdown^T chunk
            ],
            out_specs=pl.BlockSpec((1, q_tile, H), lambda b, q, i: (b, q, 0)),
            scratch_shapes=[pltpu.VMEM((q_tile, H), jnp.bfloat16)],        # post-LN h1
        ),
        compiler_params=pltpu.CompilerParams(
            dimension_semantics=("parallel", "parallel", "arbitrary"),
            vmem_limit_bytes=vmem_limit),
    )(x, attn_out, params["ln2"], params["wg_t"], params["wu_t"], params["wd_t"])

    return out


# --------------------------------------------------------------------------
# Pure-JAX f32 reference reproducing LlamaDecoderLayer.forward (causal)
# --------------------------------------------------------------------------
def reference_decoder_layer(x, cos, sin, w, num_heads, eps):
    B, S, H = x.shape
    hd = H // num_heads

    def rms(h, g):
        var = jnp.mean(h * h, axis=-1, keepdims=True)
        return h * lax.rsqrt(var + eps) * g

    def rot_half(z):
        return jnp.concatenate([-z[..., hd // 2:], z[..., :hd // 2]], axis=-1)

    xn = rms(x, w["ln1"][0])
    q = (xn @ w["wq_t"]).reshape(B, S, num_heads, hd).transpose(0, 2, 1, 3)
    k = (xn @ w["wk_t"]).reshape(B, S, num_heads, hd).transpose(0, 2, 1, 3)
    v = (xn @ w["wv_t"]).reshape(B, S, num_heads, hd).transpose(0, 2, 1, 3)
    c, s = cos[None, None], sin[None, None]
    q = q * c + rot_half(q) * s
    k = k * c + rot_half(k) * s
    scores = jnp.einsum("bhqd,bhkd->bhqk", q, k) / math.sqrt(hd)
    causal = jnp.triu(jnp.full((S, S), -1e9, jnp.float32), k=1)
    scores = scores + causal[None, None]
    probs = jax.nn.softmax(scores.astype(jnp.float32), axis=-1)
    attn = jnp.einsum("bhqk,bhkd->bhqd", probs, v)
    attn = attn.transpose(0, 2, 1, 3).reshape(B, S, H) @ w["wo_t"]
    h1 = x + attn
    h1n = rms(h1, w["ln2"][0])
    g = h1n @ w["wg_t"]
    u = h1n @ w["wu_t"]
    mlp = (g * jax.nn.sigmoid(g) * u) @ w["wd_t"]
    return h1 + mlp


if __name__ == "__main__":
    # Small, lane-aligned config (head_dim = 128 keeps MXU contractions and the
    # RoPE roll full-lane-width); S = 256 gives 2 q-tiles x 2 kv-tiles so the
    # flash loop, causal-skip and MLP I-tiling are all exercised.
    B, S, H = 2, 256, 256
    num_heads = 2
    head_dim = H // num_heads     # 128
    I = 512                       # intermediate_size
    eps = 1e-6                    # rms_norm_eps

    key = jax.random.PRNGKey(0)
    ks = jax.random.split(key, 8)

    def init_w(k, shape):
        w = jax.random.normal(k, shape, jnp.float32) * 0.02
        # round-trip through bf16 so kernel (bf16 weights) and f32 reference
        # see identical weight values
        return w.astype(jnp.bfloat16).astype(jnp.float32)

    # nn.Linear weights are (out_features, in_features); pre-transpose so the
    # kernels compute x @ W^T as x @ (pre-transposed W).
    wq = init_w(ks[0], (H, H))
    wk = init_w(ks[1], (H, H))
    wv = init_w(ks[2], (H, H))
    wo = init_w(ks[3], (H, H))
    wg = init_w(ks[4], (I, H))
    wu = init_w(ks[5], (I, H))
    wd = init_w(ks[6], (H, I))

    ln1 = jnp.ones((1, H), jnp.float32)   # LlamaRMSNorm init = ones
    ln2 = jnp.ones((1, H), jnp.float32)

    params_f32 = {"wq_t": wq.T, "wk_t": wk.T, "wv_t": wv.T, "wo_t": wo.T,
                  "wg_t": wg.T, "wu_t": wu.T, "wd_t": wd.T,
                  "ln1": ln1, "ln2": ln2}
    params_kernel = {k: (v.astype(jnp.bfloat16) if k.startswith("w") else v)
                     for k, v in params_f32.items()}

    x = jax.random.normal(ks[7], (B, S, H), jnp.float32)

    # Rotary tables (half-split convention), computed once outside the kernel.
    inv_freq = 1.0 / (10000.0 ** (jnp.arange(0, head_dim, 2, dtype=jnp.float32)
                                  / head_dim))
    pos = jnp.arange(S, dtype=jnp.float32)
    freqs = jnp.outer(pos, inv_freq)                  # (S, hd/2)
    emb = jnp.concatenate([freqs, freqs], axis=-1)    # (S, hd)
    cos, sin = jnp.cos(emb), jnp.sin(emb)
    # rotate_half(x) == pltpu.roll(x, hd//2, axis=-1) * sign ; fold sign into sin.
    sign = jnp.concatenate([-jnp.ones((head_dim // 2,), jnp.float32),
                            jnp.ones((head_dim // 2,), jnp.float32)])
    sin_signed = sin * sign[None, :]

    out = llama_decoder_layer(x, cos, sin_signed, params_kernel,
                              num_heads=num_heads, eps=eps,
                              q_tile=128, kv_tile=128, s_tile=128, i_tile=256)
    out = jax.block_until_ready(out)

    ref = reference_decoder_layer(x, cos, sin, params_f32, num_heads, eps)
    ref = jax.block_until_ready(ref)

    np.testing.assert_allclose(np.asarray(out), np.asarray(ref),
                               rtol=2e-2, atol=2e-2)
    print("KERNEL_OK")
</pallas_src>

<mosaic_0001>
module attributes {stable_mosaic.version = 11 : i64} {
  func.func @qkv_rope_kernel(%arg0: i32, %arg1: i32, %arg2: i32, %arg3: memref<1x128x256xf32, #tpu.memory_space<vmem>>, %arg4: memref<128x128xf32, #tpu.memory_space<vmem>>, %arg5: memref<128x128xf32, #tpu.memory_space<vmem>>, %arg6: memref<256x128xbf16, #tpu.memory_space<vmem>>, %arg7: memref<256x128xbf16, #tpu.memory_space<vmem>>, %arg8: memref<256x128xbf16, #tpu.memory_space<vmem>>, %arg9: memref<1x256xf32, #tpu.memory_space<vmem>>, %arg10: memref<1x1x128x128xbf16, #tpu.memory_space<vmem>>, %arg11: memref<1x1x128x128xbf16, #tpu.memory_space<vmem>>, %arg12: memref<1x1x128x128xbf16, #tpu.memory_space<vmem>>, %arg13: memref<128x256xbf16, #tpu.memory_space<vmem>>) attributes {dimension_semantics = [#tpu.dimension_semantics<parallel>, #tpu.dimension_semantics<parallel>, #tpu.dimension_semantics<arbitrary>], iteration_bounds = array<i64: 2, 2, 2>, scalar_prefetch = 0 : i64, scratch_operands = 1 : i64, tpu.core_type = #tpu.core_type<tc>, window_params = [{transform_indices = @transform_0, window_bounds = array<i64: 1, 128, 256>}, {transform_indices = @transform_1, window_bounds = array<i64: 128, 128>}, {transform_indices = @transform_2, window_bounds = array<i64: 128, 128>}, {transform_indices = @transform_3, window_bounds = array<i64: 256, 128>}, {transform_indices = @transform_4, window_bounds = array<i64: 256, 128>}, {transform_indices = @transform_5, window_bounds = array<i64: 256, 128>}, {pipeline_mode = #tpu.pipeline_mode<synchronous>, transform_indices = @transform_6, window_bounds = array<i64: 1, 256>}, {transform_indices = @transform_7, window_bounds = array<i64: 1, 1, 128, 128>}, {transform_indices = @transform_8, window_bounds = array<i64: 1, 1, 128, 128>}, {transform_indices = @transform_9, window_bounds = array<i64: 1, 1, 128, 128>}]} {
    %c0_i32 = arith.constant 0 : i32
    %0 = arith.cmpi eq, %arg2, %c0_i32 : i32
    %1 = arith.extui %0 : i1 to i32
    %c0_i32_0 = arith.constant 0 : i32
    %2 = arith.cmpi ne, %1, %c0_i32_0 : i32
    scf.if %2 {
      %c0_28 = arith.constant 0 : index
      %c0_29 = arith.constant 0 : index
      %c0_30 = arith.constant 0 : index
      %34 = vector.load %arg3[%c0_28, %c0_29, %c0_30] : memref<1x128x256xf32, #tpu.memory_space<vmem>>, vector<1x128x256xf32>
      %35 = vector.shape_cast %34 : vector<1x128x256xf32> to vector<128x256xf32>
      %36 = arith.mulf %35, %35 : vector<128x256xf32>
      %cst_31 = arith.constant dense<0.000000e+00> : vector<128xf32>
      %37 = vector.multi_reduction <add>, %36, %cst_31 [1] : vector<128x256xf32> to vector<128xf32>
      %38 = vector.shape_cast %37 : vector<128xf32> to vector<128x1xf32>
      %cst_32 = arith.constant 2.560000e+02 : f32
      %39 = vector.broadcast %cst_32 : f32 to vector<128x1xf32>
      %40 = arith.divf %38, %39 : vector<128x1xf32>
      %cst_33 = arith.constant 9.99999997E-7 : f32
      %41 = vector.broadcast %cst_33 : f32 to vector<128x1xf32>
      %42 = arith.addf %40, %41 : vector<128x1xf32>
      %43 = math.rsqrt %42 : vector<128x1xf32>
      %44 = vector.broadcast %43 : vector<128x1xf32> to vector<128x256xf32>
      %45 = arith.mulf %35, %44 : vector<128x256xf32>
      %c0_34 = arith.constant 0 : index
      %c0_35 = arith.constant 0 : index
      %46 = vector.load %arg9[%c0_34, %c0_35] : memref<1x256xf32, #tpu.memory_space<vmem>>, vector<1x256xf32>
      %47 = vector.broadcast %46 : vector<1x256xf32> to vector<128x256xf32>
      %48 = arith.mulf %45, %47 : vector<128x256xf32>
      %49 = arith.truncf %48 : vector<128x256xf32> to vector<128x256xbf16>
      %c0_36 = arith.constant 0 : index
      %c0_37 = arith.constant 0 : index
      %50 = vector.load %arg13[%c0_36, %c0_37] : memref<128x256xbf16, #tpu.memory_space<vmem>>, vector<128x256xbf16>
      tpu.vector_store %arg13[%c0_36, %c0_37], %49 {strides = array<i32>} : memref<128x256xbf16, #tpu.memory_space<vmem>>, vector<128x256xbf16>,
    } else {
    }
    %c0 = arith.constant 0 : index
    %c0_1 = arith.constant 0 : index
    %3 = vector.load %arg13[%c0, %c0_1] : memref<128x256xbf16, #tpu.memory_space<vmem>>, vector<128x256xbf16>
    %c0_2 = arith.constant 0 : index
    %c0_3 = arith.constant 0 : index
    %4 = vector.load %arg4[%c0_2, %c0_3] : memref<128x128xf32, #tpu.memory_space<vmem>>, vector<128x128xf32>
    %c0_4 = arith.constant 0 : index
    %c0_5 = arith.constant 0 : index
    %5 = vector.load %arg5[%c0_4, %c0_5] : memref<128x128xf32, #tpu.memory_space<vmem>>, vector<128x128xf32>
    %c0_6 = arith.constant 0 : index
    %c0_7 = arith.constant 0 : index
    %6 = vector.load %arg6[%c0_6, %c0_7] : memref<256x128xbf16, #tpu.memory_space<vmem>>, vector<256x128xbf16>
    %cst = arith.constant dense<0.000000e+00> : vector<128x128xf32>
    %7 = tpu.matmul %3, %6, %cst {dimension_numbers = #tpu.dot_dimension_numbers<[1], [0], [0], [1], [0, 0, 1, 1], [], []>} : vector<128x256xbf16>, vector<256x128xbf16>, vector<128x128xf32> -> vector<128x128xf32>
    %cst_8 = arith.constant 0.0883883461 : f32
    %8 = vector.broadcast %cst_8 : f32 to vector<128x128xf32>
    %9 = arith.mulf %7, %8 : vector<128x128xf32>
    %10 = arith.mulf %9, %4 : vector<128x128xf32>
    %c64_i32 = arith.constant 64 : i32
    %11 = tpu.dynamic_rotate %9 by %c64_i32 dim 1 : vector<128x128xf32>, i32 -> vector<128x128xf32>
    %12 = arith.mulf %11, %5 : vector<128x128xf32>
    %13 = arith.addf %10, %12 : vector<128x128xf32>
    %c0_9 = arith.constant 0 : index
    %c0_10 = arith.constant 0 : index
    %14 = vector.load %arg7[%c0_9, %c0_10] : memref<256x128xbf16, #tpu.memory_space<vmem>>, vector<256x128xbf16>
    %cst_11 = arith.constant dense<0.000000e+00> : vector<128x128xf32>
    %15 = tpu.matmul %3, %14, %cst_11 {dimension_numbers = #tpu.dot_dimension_numbers<[1], [0], [0], [1], [0, 0, 1, 1], [], []>} : vector<128x256xbf16>, vector<256x128xbf16>, vector<128x128xf32> -> vector<128x128xf32>
    %16 = arith.mulf %15, %4 : vector<128x128xf32>
    %c64_i32_12 = arith.constant 64 : i32
    %17 = tpu.dynamic_rotate %15 by %c64_i32_12 dim 1 : vector<128x128xf32>, i32 -> vector<128x128xf32>
    %18 = arith.mulf %17, %5 : vector<128x128xf32>
    %19 = arith.addf %16, %18 : vector<128x128xf32>
    %c0_13 = arith.constant 0 : index
    %c0_14 = arith.constant 0 : index
    %20 = vector.load %arg8[%c0_13, %c0_14] : memref<256x128xbf16, #tpu.memory_space<vmem>>, vector<256x128xbf16>
    %cst_15 = arith.constant dense<0.000000e+00> : vector<128x128xf32>
    %21 = tpu.matmul %3, %20, %cst_15 {dimension_numbers = #tpu.dot_dimension_numbers<[1], [0], [0], [1], [0, 0, 1, 1], [], []>} : vector<128x256xbf16>, vector<256x128xbf16>, vector<128x128xf32> -> vector<128x128xf32>
    %22 = arith.truncf %13 : vector<128x128xf32> to vector<128x128xbf16>
    %c0_16 = arith.constant 0 : index
    %c0_17 = arith.constant 0 : index
    %c0_18 = arith.constant 0 : index
    %c0_19 = arith.constant 0 : index
    %23 = vector.load %arg10[%c0_16, %c0_17, %c0_18, %c0_19] : memref<1x1x128x128xbf16, #tpu.memory_space<vmem>>, vector<1x1x128x128xbf16>
    %24 = vector.shape_cast %23 : vector<1x1x128x128xbf16> to vector<128x128xbf16>
    %25 = vector.shape_cast %22 : vector<128x128xbf16> to vector<1x1x128x128xbf16>
    tpu.vector_store %arg10[%c0_16, %c0_17, %c0_18, %c0_19], %25 {strides = array<i32>} : memref<1x1x128x128xbf16, #tpu.memory_space<vmem>>, vector<1x1x128x128xbf16>,
    %26 = arith.truncf %19 : vector<128x128xf32> to vector<128x128xbf16>
    %c0_20 = arith.constant 0 : index
    %c0_21 = arith.constant 0 : index
    %c0_22 = arith.constant 0 : index
    %c0_23 = arith.constant 0 : index
    %27 = vector.load %arg11[%c0_20, %c0_21, %c0_22, %c0_23] : memref<1x1x128x128xbf16, #tpu.memory_space<vmem>>, vector<1x1x128x128xbf16>
    %28 = vector.shape_cast %27 : vector<1x1x128x128xbf16> to vector<128x128xbf16>
    %29 = vector.shape_cast %26 : vector<128x128xbf16> to vector<1x1x128x128xbf16>
    tpu.vector_store %arg11[%c0_20, %c0_21, %c0_22, %c0_23], %29 {strides = array<i32>} : memref<1x1x128x128xbf16, #tpu.memory_space<vmem>>, vector<1x1x128x128xbf16>,
    %30 = arith.truncf %21 : vector<128x128xf32> to vector<128x128xbf16>
    %c0_24 = arith.constant 0 : index
    %c0_25 = arith.constant 0 : index
    %c0_26 = arith.constant 0 : index
    %c0_27 = arith.constant 0 : index
    %31 = vector.load %arg12[%c0_24, %c0_25, %c0_26, %c0_27] : memref<1x1x128x128xbf16, #tpu.memory_space<vmem>>, vector<1x1x128x128xbf16>
    %32 = vector.shape_cast %31 : vector<1x1x128x128xbf16> to vector<128x128xbf16>
    %33 = vector.shape_cast %30 : vector<128x128xbf16> to vector<1x1x128x128xbf16>
    tpu.vector_store %arg12[%c0_24, %c0_25, %c0_26, %c0_27], %33 {strides = array<i32>} : memref<1x1x128x128xbf16, #tpu.memory_space<vmem>>, vector<1x1x128x128xbf16>,
    return
  }
  func.func @transform_0(%arg0: i32, %arg1: i32, %arg2: i32) -> (i32, i32, i32) {
    %c0_i32 = arith.constant 0 : i32
    %c0_i32_0 = arith.constant 0 : i32
    return %arg0, %arg1, %c0_i32 : i32, i32, i32
  }
  func.func @transform_1(%arg0: i32, %arg1: i32, %arg2: i32) -> (i32, i32) {
    %c0_i32 = arith.constant 0 : i32
    %c0_i32_0 = arith.constant 0 : i32
    return %arg1, %c0_i32 : i32, i32
  }
  func.func @transform_2(%arg0: i32, %arg1: i32, %arg2: i32) -> (i32, i32) {
    %c0_i32 = arith.constant 0 : i32
    %c0_i32_0 = arith.constant 0 : i32
    return %arg1, %c0_i32 : i32, i32
  }
  func.func @transform_3(%arg0: i32, %arg1: i32, %arg2: i32) -> (i32, i32) {
    %c0_i32 = arith.constant 0 : i32
    %c0_i32_0 = arith.constant 0 : i32
    return %c0_i32, %arg2 : i32, i32
  }
  func.func @transform_4(%arg0: i32, %arg1: i32, %arg2: i32) -> (i32, i32) {
    %c0_i32 = arith.constant 0 : i32
    %c0_i32_0 = arith.constant 0 : i32
    return %c0_i32, %arg2 : i32, i32
  }
  func.func @transform_5(%arg0: i32, %arg1: i32, %arg2: i32) -> (i32, i32) {
    %c0_i32 = arith.constant 0 : i32
    %c0_i32_0 = arith.constant 0 : i32
    return %c0_i32, %arg2 : i32, i32
  }
  func.func @transform_6(%arg0: i32, %arg1: i32, %arg2: i32) -> (i32, i32) {
    %c0_i32 = arith.constant 0 : i32
    %c0_i32_0 = arith.constant 0 : i32
    %c0_i32_1 = arith.constant 0 : i32
    return %c0_i32, %c0_i32_0 : i32, i32
  }
  func.func @transform_7(%arg0: i32, %arg1: i32, %arg2: i32) -> (i32, i32, i32, i32) {
    %c0_i32 = arith.constant 0 : i32
    %c0_i32_0 = arith.constant 0 : i32
    return %arg0, %arg2, %arg1, %c0_i32 : i32, i32, i32, i32
  }
  func.func @transform_8(%arg0: i32, %arg1: i32, %arg2: i32) -> (i32, i32, i32, i32) {
    %c0_i32 = arith.constant 0 : i32
    %c0_i32_0 = arith.constant 0 : i32
    return %arg0, %arg2, %arg1, %c0_i32 : i32, i32, i32, i32
  }
  func.func @transform_9(%arg0: i32, %arg1: i32, %arg2: i32) -> (i32, i32, i32, i32) {
    %c0_i32 = arith.constant 0 : i32
    %c0_i32_0 = arith.constant 0 : i32
    return %arg0, %arg2, %arg1, %c0_i32 : i32, i32, i32, i32
  }
}

</mosaic_0001>

<bundles_post_ra>
// kernel: tpu_custom_call.1
= control target key start
LH: loop header
LB: loop body
LE: loop exit
PB: predicated region body
PF: predicated region fallthrough
CT: control target
= control target key end

     0   :  { %s5079_s0 = inlined_call_operand.hbm [shape: f32[2,256,256], index: 0, kind: input, shape index: {}]   ;;  %s5080_s1 = inlined_call_operand.hbm [shape: f32[256,128], index: 1, kind: input, shape index: {}]   ;;  %s5081_s2 = inlined_call_operand.hbm [shape: f32[256,128], index: 2, kind: input, shape index: {}]   ;;  %s5082_s3 = inlined_call_operand.hbm [shape: bf16[256,256], index: 3, kind: input, shape index: {}]   ;;  %s5083_s4 = inlined_call_operand.hbm [shape: bf16[256,256], index: 4, kind: input, shape index: {}]   ;;  %s5084_s5 = inlined_call_operand.hbm [shape: bf16[256,256], index: 5, kind: input, shape index: {}]   ;;  %s5085_s6 = inlined_call_operand.vmem [shape: f32[1,256], index: 6, kind: input, shape index: {}]   ;;  %s5086_s7 = inlined_call_operand.hbm [shape: bf16[2,2,256,128], index: 7, kind: output, shape index: {0}]   ;;  %s5087_s8 = inlined_call_operand.hbm [shape: bf16[2,2,256,128], index: 8, kind: output, shape index: {1}]   ;;  %s5088_s9 = inlined_call_operand.hbm [shape: bf16[2,2,256,128], index: 9, kind: output, shape index: {2}]  }
   0x1   :  { %5148 = sst [smem:[#allocation51_spill]] %s5079_s0 }
   0x2   :  { %5149 = sst [smem:[#allocation52_spill]] %s5080_s1 }
   0x3   :  { %5150 = sst [smem:[#allocation53_spill]] %s5081_s2 }
   0x4   :  { %5151 = sst [smem:[#allocation54_spill]] %s5082_s3 }
   0x5   :  { %5152 = sst [smem:[#allocation55_spill]] %s5083_s4 }
   0x6   :  { %5153 = sst [smem:[#allocation56_spill]] %s5084_s5 }
   0x7   :  { %5154 = sst [smem:[#allocation57_spill]] %s5085_s6 }
   0x8   :  { %5155 = sst [smem:[#allocation58_spill]] %s5086_s7 }
   0x9   :  { %5156 = sst [smem:[#allocation59_spill]] %s5087_s8 }
   0xa   :  { %5157 = sst [smem:[#allocation60_spill]] %s5088_s9 }
   0xb   :  { %15 = vsyncpa [#allocation4], 0 }
   0xc   :  { %17 = vsyncpa [#allocation4 + $0x1], 0 }
   0xd   :  { %18 = vsyncpa [#allocation7], 0 }
   0xe   :  { %20 = vsyncpa [#allocation7 + $0x1], 0 }
   0xf   :  { %21 = vsyncpa [#allocation10], 0 }
  0x10   :  { %23 = vsyncpa [#allocation10 + $0x1], 0 }
  0x11   :  { %24 = vsyncpa [#allocation13], 0 }
  0x12   :  { %26 = vsyncpa [#allocation13 + $0x1], 0 }
  0x13   :  { %27 = vsyncpa [#allocation5], 0 }
  0x14   :  { %29 = vsyncpa [#allocation5 + $0x1], 0 }
  0x15   :  { %30 = vsyncpa [#allocation16], 0 }
  0x16   :  { %32 = vsyncpa [#allocation16 + $0x1], 0  ;;  %s3702_s30 = smov 0   ;;  %s3704_s10 = smov 0  }
  0x17   :  { %s3706_s11 = smov 0   ;;  %s3708_s12 = smov 0  }
  0x18   :  { %s3710_s13 = smov 0   ;;  %s3712_s14 = smov 0  }
  0x19   :  { %s3714_s15 = smov 0   ;;  %s3716_s16 = smov 0  }
  0x1a   :  { %s3718_s17 = smov 0   ;;  %s3720_s18 = smov 0  }
  0x1b   :  { %5158 = sst [smem:[#allocation24_spill]] %s3720_s18  ;;  %s3722_s19 = smov 0  }
  0x1c   :  { %s3724_s20 = smov 0   ;;  %s3726_s21 = smov 0  }
  0x1d   :  { %s3728_s22 = smov 0   ;;  %s3730_s23 = smov 0  }
  0x1e   :  { %s3732_s24 = smov 0   ;;  %s3734_s25 = smov 0  }
  0x1f   :  { %s3736_s26 = smov 0   ;;  %s3738_s27 = smov 0  }
  0x20 LB: > { %s5160_s18 = sld [smem:[#allocation24_spill]]  ;;  %5162 = sst [smem:[#allocation25_spill]] %s3565_s10  ;;  %s3633_s27 = sphi %s3738_s27, %s38_s27   ;;  %s3629_s26 = sphi %s3736_s26, %s5281_s26   ;;  %s3625_s25 = sphi %s3734_s25, %s5290_s25   ;;  %s3621_s24 = sphi %s3732_s24, %s5278_s24   ;;  %s3617_s23 = sphi %s3730_s23, %s5277_s23   ;;  %s3613_s22 = sphi %s3728_s22, %s5289_s22   ;;  %s3609_s21 = sphi %s3726_s21, %s5276_s21   ;;  %s3605_s20 = sphi %s3724_s20, %s5288_s20   ;;  %s3601_s19 = sphi %s3722_s19, %s5287_s19   ;;  %s3593_s17 = sphi %s3718_s17, %s5274_s17   ;;  %s3589_s16 = sphi %s3716_s16, %s5273_s16   ;;  %s3585_s15 = sphi %s3714_s15, %s5272_s15   ;;  %s3581_s14 = sphi %s3712_s14, %s5285_s14   ;;  %s3577_s13 = sphi %s3710_s13, %s5284_s13   ;;  %s3573_s12 = sphi %s3708_s12, %s5270_s12   ;;  %s3569_s11 = sphi %s3706_s11, %s5282_s11   ;;  %s3565_s10 = sphi %s3704_s10, %s5280_s10   ;;  %s3561_s30 = sphi %s3702_s30, %s5269_s30  }
  0x21   : > { %5161 = sst [smem:[#allocation24_spill]] %s3561_s30  ;;  %s3796_s28 = sadd.s32 4294967295, %s3633_s27  }
  0x22   : > { %5163 = sst [smem:[#allocation26_spill]] %s3577_s13  ;;  %p5101_p0 = scmp.eq.s32.totalorder %s3633_s27, 0 }
  0x23   : > { %5164 = sst [smem:[#allocation27_spill]] %s3589_s16  ;;  %p5100_p1 = scmp.eq.s32.totalorder %s3796_s28, 0 }
  0x24   : > { %5165 = sst [smem:[#allocation28_spill]] %s3593_s17  ;;  %p99_p2 = scmp.ne.s32.totalorder %s3593_s17, %s3589_s16 }
  0x25   : > { %5166 = sst [smem:[#allocation29_spill]] %s3609_s21  ;;  %p105_p3 = scmp.ne.s32.totalorder %s3589_s16, %s3585_s15 }
  0x26   : > { %5167 = sst [smem:[#allocation30_spill]] %s3613_s22  ;;  %p101_p5 = por %p99_p2, %p5101_p0 }
  0x27   : > { %5168 = sst [smem:[#allocation31_spill]] %s3617_s23  ;;  %p3810_p6 = por %p105_p3, %p5100_p1 }
  0x28   : > { %5169 = sst [smem:[#allocation32_spill]] %s3621_s24  ;;  %p5098_p7 = scmp.lt.s32.totalorder %s3633_s27, 8 }
  0x29   : > { %5170 = sst [smem:[#allocation33_spill]] %s3629_s26  ;;  %s5099_s8 = sand.u32 1, %s3633_s27  }
  0x2a   : > { %s5171_s9 = scalar_select %p3810_p6, 1, 0 }
  0x2b   : > { %s373_s23 = sand.u32 1, %s3593_s17   ;;  %s5095_s29 = sshll.u32 %s3625_s25, 11 }
  0x2c   : > { %5172 = sst [smem:[#allocation34_spill]] %s5171_s9  ;;  %s3817_s22 = sshll.u32 %s373_s23, 7 }
  0x2d   : > { %s5173_s1 = sld [smem:[#allocation52_spill]]  ;;  %s375_s21 = scalar_lea.vmem [#allocation6], %s3817_s22 }
  0x2e   : > { %s382_s16 = sshll.u32 %s375_s21, 4  ;;  %p3832_p8 = pnand %p5098_p7, %p101_p5  ;;  %s3828_s16 = int_to_ptr.vmem [resolvable:$true] %s382_s16 }
  0x2f   : > { %s3838_s9 = scalar_lea.sflag [#allocation7], %s5099_s8 }
  0x30   : > { %s5174_s23 = scalar_select %p3832_p8, 1, 0 }
  0x31   : > { %5176 = sst [smem:[#allocation36_spill]] %s3838_s9  ;;  %p5120_p10 = pneg %p3832_p8 }
  0x32   : > { %5175 = sst [smem:[#allocation35_spill]] %s5174_s23 }
  0x33   : > { %s3825_s15 = scalar_lea.hbm %s5173_s1, %s5095_s29  ;;  %s3200_s29 = scalar_lea.hbm %s5173_s1, 4096 }
  0x34   : > { %s3195_s6 = scalar_lea.hbm %s3825_s15, 2048  ;;  %p3201_p13 = scmp.lt.u32.totalorder %s3825_s15, %s5173_s1 }
  0x35   : > { %p3196_p9 = scmp.ne.s32.totalorder %s3825_s15, %s3195_s6  ;;  %p3202_p2 = scmp.lt.u32.totalorder %s3200_s29, %s3195_s6 }
  0x36   : > { %p3204_p5 = scmp.lt.u32.totalorder %s3195_s6, %s3825_s15 }
  0x37   : > { %p3198_p11 = pnand %p5120_p10, %p3196_p9  ;;  %p3203_p3 = por %p3202_p2, %p3201_p13 }
  0x39   : > { %p3199_p12 = pneg %p3198_p11  ;;  %p3205_p4 = por %p3204_p5, %p3203_p3 }
  0x3b   : > { %p3206_p7 = pnand %p3205_p4, %p3199_p12 }
  0x3d   : > { %3209 = shalt.err (!%p3206_p7)
}
  0x3e   : > { %s3210_s8 = scalar_lea.vmem %s3828_s16, 2048  ;;  %s3635_s7 = smov [#allocation6]  }
  0x3f   : > { %p3211_p9 = scmp.ne.s32.totalorder %s3828_s16, %s3210_s8  ;;  %s3215_s21 = sshll.u32 %s3635_s7, 4  ;;  %s3216_s21 = int_to_ptr.vmem [resolvable:$false] %s3215_s21 }
  0x40   : > { %s3217_s4 = scalar_lea.vmem %s3216_s21, 4096  ;;  %p3218_p0 = scmp.lt.s32.totalorder %s3828_s16, %s3216_s21 }
  0x41   : > { %p3213_p11 = pnand %p3211_p9, %p5120_p10  ;;  %p3219_p13 = scmp.lt.s32.totalorder %s3217_s4, %s3210_s8 }
  0x43   : > { %p3214_p1 = pneg %p3213_p11  ;;  %p3220_p2 = por %p3219_p13, %p3218_p0 }
  0x45   : > { %p3221_p3 = pnand %p3220_p2, %p3214_p1 }
  0x47   : > { %3224 = shalt.err (!%p3221_p3)
}
  0x48   : > { %s5105_s5 = smov 128   ;;  %s5104_s8 = smov 8  }
  0x49   : > { %2930 = dma.hbm_to_vmem [thread:$0]  (!%p3832_p8), %s3825_s15, 2048, %s3828_s16, %s3838_s9, %s5105_s5, %s5105_s5, %s5104_s8  }
  0x4a   : > { %s5177_s29 = sshll.u32 %s3625_s25, 11  ;;  %s5178_s2 = sld [smem:[#allocation53_spill]] }
  0x4b   : > { %s396_s4 = scalar_lea.vmem [#allocation8], %s3817_s22  ;;  %p2382_p0 = scmp.ge.s32.totalorder %s3633_s27, 1 }
  0x4c   : > { %s403_s1 = sshll.u32 %s396_s4, 4  ;;  %p471_p1 = scmp.lt.s32.totalorder %s3633_s27, 9  ;;  %s3877_s1 = int_to_ptr.vmem [resolvable:$true] %s403_s1 }
  0x4d   : > { %5180 = sst [smem:[#allocation38_spill]] %s3877_s1  ;;  %s50_s16 = sadd.s32 1, %s3621_s24 }
  0x4e   : > { %p3881_p4 = pnand %p2382_p0, %p471_p1  ;;  %p51_p7 = scmp.ge.s32.totalorder %s50_s16, 2 }
  0x4f   : > { %s144_s15 = sadd.s32 1, %s3581_s14  ;;  %p151_p12 = scmp.ne.s32.totalorder %s3581_s14, %s3577_s13 }
  0x50   : > { %s3874_s21 = scalar_lea.hbm %s5178_s2, %s5177_s29  ;;  %p157_p5 = scmp.ne.s32.totalorder %s3577_s13, %s3573_s12 }
  0x51   : > { %5179 = sst [smem:[#allocation37_spill]] %s3874_s21  ;;  %s5292_s16 = smov (%p51_p7, %s50_s16), 0 }
  0x52   : > { %s5181_s23 = scalar_select %p3881_p4, 1, 0 }
  0x53   : > { %5183 = sst [smem:[#allocation40_spill]] %s5292_s16  ;;  %s5184_s22 = sadd.s32 1, %s3625_s25 }
  0x54   : > { %5182 = sst [smem:[#allocation39_spill]] %s5181_s23  ;;  %s5294_s22 = smov (!%p51_p7, %s5184_s22), %s3625_s25 }
  0x55   : > { %s3900_s29 = ssub.s32 %s3621_s24, %s5292_s16  ;;  %p5185_p9 = scmp.eq.s32.totalorder %s3633_s27, 0 }
  0x56   : > { %p5121_p13 = scmp.ge.s32.totalorder %s5294_s22, 2  ;;  %p142_p2 = scmp.eq.s32.totalorder %s3900_s29, 0 }
  0x57   : > { %p3904_p11 = por %p151_p12, %p5185_p9  ;;  %p5187_p3 = scmp.eq.s32.totalorder %s3796_s28, 0 }
  0x58   : > { %s5116_s7 = sand.u32 1, %s3581_s14   ;;  %s3935_s13 = sshll.u32 %s3621_s24, 6 }
  0x59   : > { %p3912_p0 = por %p157_p5, %p5187_p3  ;;  %s3931_s16 = sshll.u32 %s5116_s7, 7 }
  0x5a   : > { %s3920_s4 = scalar_select %p5121_p13, 0, %s5294_s22  }
  0x5b   : > { %s5188_s12 = scalar_select %p3912_p0, 1, 0 }
  0x5c   : > { %5190 = sst [smem:[#allocation42_spill]] %s3920_s4  ;;  %s3927_s5 = ssub.s32 %s3625_s25, %s3920_s4 }
  0x5d   : > { %5189 = sst [smem:[#allocation41_spill]] %s5188_s12  ;;  %p90_p1 = scmp.eq.s32.totalorder %s3927_s5, 0 }
  0x5e   : > { %s3923_s8 = scalar_select %p142_p2, %s3581_s14, %s144_s15  }
  0x5f   : > { %s417_s23 = scalar_lea.vmem [#allocation9], %s3931_s16  ;;  %s5192_s9 = sadd.s32 1, %s3593_s17 }
  0x60   : > { %5191 = sst [smem:[#allocation43_spill]] %s3923_s8  ;;  %s423_s12 = sshll.u32 %s417_s23, 4  ;;  %s3949_s12 = int_to_ptr.vmem [resolvable:$true] %s423_s12 }
  0x61   : > { %s3941_s1 = scalar_select %p90_p1, %s3593_s17, %s5192_s9  }
  0x62   : > { %s5194_s3 = sld [smem:[#allocation54_spill]]  ;;  %p5195_p7 = scmp.lt.s32.totalorder %s3633_s27, 8 }
  0x63   : > { %5193 = sst [smem:[#allocation44_spill]] %s3941_s1  ;;  %s5197_s23 = sand.u32 1, %s3633_s27  }
  0x64   : > { %p3955_p12 = pnand %p5195_p7, %p3904_p11  ;;  %s3961_s9 = scalar_lea.sflag [#allocation10], %s5197_s23 }
  0x66   : > { %s5196_s7 = scalar_select %p3955_p12, 1, 0 }
  0x67   : > { %p3967_p9 = pneg %p3955_p12 }
  0x68   : > { %s3947_s15 = scalar_lea.hbm %s5194_s3, %s3935_s13  ;;  %s3230_s24 = scalar_lea.hbm %s5194_s3, 4096 }
  0x69   : > { %s3225_s4 = scalar_lea.hbm %s3947_s15, 2048  ;;  %p3231_p11 = scmp.lt.u32.totalorder %s3947_s15, %s5194_s3 }
  0x6a   : > { %p3226_p5 = scmp.ne.s32.totalorder %s3947_s15, %s3225_s4  ;;  %p3232_p1 = scmp.lt.u32.totalorder %s3230_s24, %s3225_s4 }
  0x6b   : > { %p3234_p10 = scmp.lt.u32.totalorder %s3225_s4, %s3947_s15 }
  0x6c   : > { %p3228_p2 = pnand %p3967_p9, %p3226_p5  ;;  %p3233_p7 = por %p3232_p1, %p3231_p11 }
  0x6e   : > { %p3229_p3 = pneg %p3228_p2  ;;  %p3235_p13 = por %p3234_p10, %p3233_p7 }
  0x70   : > { %p3236_p0 = pnand %p3235_p13, %p3229_p3 }
  0x72   : > { %3239 = shalt.err (!%p3236_p0)
}
  0x73   : > { %s3240_s23 = scalar_lea.vmem %s3949_s12, 2048  ;;  %s3638_s21 = smov [#allocation9]  }
  0x74   : > { %p3241_p5 = scmp.ne.s32.totalorder %s3949_s12, %s3240_s23  ;;  %s3245_s6 = sshll.u32 %s3638_s21, 4  ;;  %s3246_s6 = int_to_ptr.vmem [resolvable:$false] %s3245_s6 }
  0x75   : > { %s3247_s1 = scalar_lea.vmem %s3246_s6, 4096  ;;  %p3248_p4 = scmp.lt.s32.totalorder %s3949_s12, %s3246_s6 }
  0x76   : > { %p3243_p2 = pnand %p3241_p5, %p3967_p9  ;;  %p3249_p8 = scmp.lt.s32.totalorder %s3247_s1, %s3240_s23 }
  0x78   : > { %p3244_p6 = pneg %p3243_p2  ;;  %p3250_p11 = por %p3249_p8, %p3248_p4 }
  0x7a   : > { %p3251_p1 = pnand %p3250_p11, %p3244_p6 }
  0x7c   : > { %3254 = shalt.err (!%p3251_p1)
}
  0x7d   : > { %s5126_s17 = smov 64   ;;  %s5128_s24 = smov 4  }
  0x7e   : > { %s5199_s4 = smov 128   ;;  %s57_s21 = sadd.s32 1, %s3629_s26 }
  0x7f   : > { %2936 = dma.hbm_to_vmem [thread:$0]  (!%p3955_p12), %s3947_s15, 2048, %s3949_s12, %s3961_s9, %s5199_s4, %s5126_s17, %s5128_s24  }
  0x80   : > { %p5200_p6 = scmp.ge.s32.totalorder %s5294_s22, 2  ;;  %s66_s6 = sadd.s32 1, %s3605_s20 }
  0x81   : > { %p73_p8 = scmp.ne.s32.totalorder %s3605_s20, %s3601_s19  ;;  %p79_p4 = scmp.ne.s32.totalorder %s3601_s19, %s5160_s18 }
  0x82   : > { %s5296_s21 = smov (!%p5200_p6, %s57_s21), %s3629_s26  ;;  %p5201_p13 = scmp.eq.s32.totalorder %s3633_s27, 0 }
  0x83   : > { %p59_p10 = scmp.ge.s32.totalorder %s5296_s21, 2  ;;  %s247_s12 = sadd.s32 1, %s3569_s11 }
  0x84   : > { %p4006_p0 = por %p5201_p13, %p73_p8  ;;  %p5204_p3 = scmp.eq.s32.totalorder %s3796_s28, 0 }
  0x85   : > { %s5298_s21 = smov (%p59_p10, %s5296_s21), 0  ;;  %p257_p5 = scmp.ne.s32.totalorder %s3569_s11, %s3565_s10 }
  0x86   : > { %5203 = sst [smem:[#allocation45_spill]] %s5298_s21  ;;  %p4015_p7 = por %p5204_p3, %p79_p4 }
  0x87   : > { %s61_s18 = ssub.s32 %s3629_s26, %s5298_s21  ;;  %p263_p2 = scmp.ne.s32.totalorder %s3565_s10, %s3561_s30 }
  0x88   : > { %s5205_s22 = scalar_select %p4015_p7, 1, 0 }
  0x89   : > { %s63_s15 = sor.u32 %s3927_s5, %s61_s18  ;;  %s242_s17 = sor.u32 %s3900_s29, %s61_s18 }
  0x8a   : > { %5206 = sst [smem:[#allocation46_spill]] %s5205_s22  ;;  %p64_p11 = scmp.eq.s32.totalorder %s63_s15, 0 }
  0x8b   : > { %s244_s24 = sor.u32 %s242_s17, %s3927_s5  ;;  %p5207_p6 = scmp.eq.s32.totalorder %s3796_s28, 7 }
  0x8c   : > { %p245_p1 = scmp.eq.s32.totalorder %s244_s24, 0  ;;  %s5210_s22 = sadd.s32 4294967294, %s3633_s27  }
  0x8d   : > { %p4030_p8 = por %p5207_p6, %p257_p5  ;;  %p264_p10 = scmp.eq.s32.totalorder %s5210_s22, 7 }
  0x8e   : > { %s4035_s3 = scalar_select %p64_p11, %s3605_s20, %s66_s6  }
  0x8f   : > { %s5208_s23 = scalar_select %p4030_p8, 1, 0 }
  0x90   : > { %5209 = sst [smem:[#allocation47_spill]] %s4035_s3  ;;  %s347_s21 = sand.u32 1, %s3605_s20  }
  0x91   : > { %s4038_s8 = scalar_select %p245_p1, %s3569_s11, %s247_s12  }
  0x92   : > { %s2365_s30 = sshll.u32 %s347_s21, 8  ;;  %p4043_p4 = por %p264_p10, %p263_p2 }
  0x93   : > { %s2506_s5 = sshll.u32 %s3625_s25, 5  ;;  %s2368_s17 = sshll.u32 %s3629_s26, 6 }
  0x94   : > { %s5211_s29 = scalar_select %p4043_p4, 1, 0 }
  0x95   : > { %s358_s24 = sadd.s32 %s2506_s5, %s2368_s17  ;;  %s351_s18 = scalar_lea.vmem [#allocation3], %s2365_s30 }
  0x96   : > { %s361_s15 = sshll.u32 %s351_s18, 4  ;;  %s2369_s10 = sshll.u32 %s358_s24, 7  ;;  %s4049_s15 = int_to_ptr.vmem [resolvable:$true] %s361_s15 }
  0x97   : > { %s5212_s0 = sld [smem:[#allocation51_spill]]  ;;  %p5213_p13 = scmp.lt.s32.totalorder %s3633_s27, 8 }
  0x98   : > { %s4064_s30 = scalar_lea.sflag [#allocation4], %s347_s21 }
  0x99   : > { %p4060_p3 = pnand %p5213_p13, %p4006_p0 }
  0x9b   : > { %p3257_p2 = pneg %p4060_p3 }
  0x9d   : > { %s4054_s12 = scalar_lea.hbm %s5212_s0, %s2369_s10  ;;  %s3260_s1 = scalar_lea.hbm %s5212_s0, 16384 }
  0x9e   : > { %s3255_s5 = scalar_lea.hbm %s4054_s12, 4096  ;;  %p3261_p0 = scmp.lt.u32.totalorder %s4054_s12, %s5212_s0 }
  0x9f   : > { %p3256_p5 = scmp.ne.s32.totalorder %s4054_s12, %s3255_s5  ;;  %p3262_p6 = scmp.lt.u32.totalorder %s3260_s1, %s3255_s5 }
  0xa0   : > { %p3264_p13 = scmp.lt.u32.totalorder %s3255_s5, %s4054_s12 }
  0xa1   : > { %p3258_p11 = pnand %p3257_p2, %p3256_p5  ;;  %p3263_p10 = por %p3262_p6, %p3261_p0 }
  0xa3   : > { %p3259_p1 = pneg %p3258_p11  ;;  %p3265_p4 = por %p3264_p13, %p3263_p10 }
  0xa5   : > { %p3266_p8 = pnand %p3265_p4, %p3259_p1 }
  0xa7   : > { %3269 = shalt.err (!%p3266_p8)
}
  0xa8   : > { %s3270_s21 = scalar_lea.vmem %s4049_s15, 4096  ;;  %s3641_s18 = smov [#allocation3]  }
  0xa9   : > { %p3271_p5 = scmp.ne.s32.totalorder %s4049_s15, %s3270_s21  ;;  %s3275_s6 = sshll.u32 %s3641_s18, 4  ;;  %s3276_s6 = int_to_ptr.vmem [resolvable:$false] %s3275_s6 }
  0xaa   : > { %s3277_s3 = scalar_lea.vmem %s3276_s6, 8192  ;;  %p3278_p12 = scmp.lt.s32.totalorder %s4049_s15, %s3276_s6 }
  0xab   : > { %p3273_p11 = pnand %p3271_p5, %p3257_p2  ;;  %p3279_p0 = scmp.lt.s32.totalorder %s3277_s3, %s3270_s21 }
  0xad   : > { %p3274_p7 = pneg %p3273_p11  ;;  %p3280_p6 = por %p3279_p0, %p3278_p12 }
  0xaf   : > { %p3281_p10 = pnand %p3280_p6, %p3274_p7 }
  0xb1   : > { %3284 = shalt.err (!%p3281_p10)
}
  0xb2   : > { %s3642_s5 = smov 256   ;;  %s5215_s10 = sld [smem:[#allocation37_spill]] }
  0xb3   : > { %s5216_s1 = sld [smem:[#allocation35_spill]]  ;;  %s3643_s17 = smov 16  }
  0xb4   : > { %2927 = dma.hbm_to_vmem [thread:$0]  (!%p4060_p3), %s4054_s12, 4096, %s4049_s15, %s4064_s30, %s3642_s5, %s3642_s5, %s3643_s17  }
  0xb5   : > { %s5219_s6 = sld [smem:[#allocation53_spill]] }
  0xb8   : > { %s3285_s24 = scalar_lea.hbm %s5215_s10, 2048 }
  0xb9   : > { %p3286_p8 = scmp.ne.s32.totalorder %s5215_s10, %s3285_s24  ;;  %p5217_p4 = scmp.ne.s32.totalorder %s5216_s1, 0 }
  0xba   : > { %p3294_p11 = scmp.lt.u32.totalorder %s3285_s24, %s5215_s10 }
  0xbb   : > { %p5218_p2 = pneg %p5217_p4  ;;  %s3290_s3 = scalar_lea.hbm %s5219_s6, 4096 }
  0xbc   : > { %p3291_p1 = scmp.lt.u32.totalorder %s5215_s10, %s5219_s6  ;;  %p3292_p13 = scmp.lt.u32.totalorder %s3290_s3, %s3285_s24 }
  0xbd   : > { %p3288_p12 = pnand %p3286_p8, %p5218_p2 }
  0xbe   : > { %p3293_p5 = por %p3292_p13, %p3291_p1 }
  0xbf   : > { %p3289_p7 = pneg %p3288_p12 }
  0xc0   : > { %p3295_p0 = por %p3294_p11, %p3293_p5 }
  0xc2   : > { %p3296_p6 = pnand %p3295_p0, %p3289_p7 }
  0xc4   : > { %3299 = shalt.err (!%p3296_p6)
}
  0xc5   : > { %s5220_s15 = sld [smem:[#allocation38_spill]]  ;;  %p5221_p10 = pmov %p5218_p2 }
  0xc6   : > { %s3644_s22 = smov [#allocation8]  }
  0xc7   : > { %s3305_s30 = sshll.u32 %s3644_s22, 4  ;;  %s3306_s30 = int_to_ptr.vmem [resolvable:$false] %s3305_s30 }
  0xc8   : > { %s3307_s0 = scalar_lea.vmem %s3306_s30, 4096 }
  0xcb   : > { %s3300_s12 = scalar_lea.vmem %s5220_s15, 2048  ;;  %p3308_p12 = scmp.lt.s32.totalorder %s5220_s15, %s3306_s30 }
  0xcc   : > { %p3301_p3 = scmp.ne.s32.totalorder %s5220_s15, %s3300_s12  ;;  %p3309_p1 = scmp.lt.s32.totalorder %s3307_s0, %s3300_s12 }
  0xce   : > { %p3303_p8 = pnand %p3301_p3, %p5221_p10  ;;  %p3310_p13 = por %p3309_p1, %p3308_p12 }
  0xd0   : > { %p3304_p2 = pneg %p3303_p8 }
  0xd2   : > { %p3311_p5 = pnand %p3310_p13, %p3304_p2 }
  0xd4   : > { %3314 = shalt.err (!%p3311_p5)
}
  0xd5   : > { %s5222_s26 = smov 8   ;;  %s5223_s5 = sld [smem:[#allocation36_spill]] }
  0xd6   : > { %s5224_s21 = sld [smem:[#allocation55_spill]]  ;;  %s437_s1 = scalar_lea.vmem [#allocation11], %s3931_s16 }
  0xd7   : > { %s443_s3 = sshll.u32 %s437_s1, 4  ;;  %s4126_s3 = int_to_ptr.vmem [resolvable:$true] %s443_s3 }
  0xdb   : > { %2933 = dma.hbm_to_vmem [thread:$0]  (!%p5217_p4), %s5215_s10, 2048, %s5220_s15, %s5223_s5, %s5199_s4, %s5199_s4, %s5222_s26  }
  0xdc   : > { %s5225_s6 = smov %s5224_s21  ;;  %s4123_s18 = scalar_lea.hbm %s5224_s21, %s3935_s13 }
  0xdd   : > { %s3315_s12 = scalar_lea.hbm %s4123_s18, 2048  ;;  %s3320_s15 = scalar_lea.hbm %s5225_s6, 4096 }
  0xde   : > { %p3316_p7 = scmp.ne.s32.totalorder %s4123_s18, %s3315_s12  ;;  %p3321_p4 = scmp.lt.u32.totalorder %s4123_s18, %s5225_s6 }
  0xdf   : > { %p3322_p6 = scmp.lt.u32.totalorder %s3320_s15, %s3315_s12  ;;  %p3324_p10 = scmp.lt.u32.totalorder %s3315_s12, %s4123_s18 }
  0xe0   : > { %p3318_p11 = pnand %p3316_p7, %p3967_p9 }
  0xe1   : > { %p3323_p3 = por %p3322_p6, %p3321_p4 }
  0xe2   : > { %p3319_p0 = pneg %p3318_p11 }
  0xe3   : > { %p3325_p8 = por %p3324_p10, %p3323_p3 }
  0xe5   : > { %p3326_p2 = pnand %p3325_p8, %p3319_p0 }
  0xe7   : > { %3329 = shalt.err (!%p3326_p2)
}
  0xe8   : > { %s3330_s26 = scalar_lea.vmem %s4126_s3, 2048  ;;  %s3645_s5 = smov [#allocation11]  }
  0xe9   : > { %p3331_p12 = scmp.ne.s32.totalorder %s4126_s3, %s3330_s26  ;;  %s3335_s17 = sshll.u32 %s3645_s5, 4  ;;  %s3336_s17 = int_to_ptr.vmem [resolvable:$false] %s3335_s17 }
  0xea   : > { %s3337_s24 = scalar_lea.vmem %s3336_s17, 4096  ;;  %p3338_p5 = scmp.lt.s32.totalorder %s4126_s3, %s3336_s17 }
  0xeb   : > { %p3333_p1 = pnand %p3331_p12, %p3967_p9  ;;  %p3339_p7 = scmp.lt.s32.totalorder %s3337_s24, %s3330_s26 }
  0xed   : > { %p3334_p13 = pneg %p3333_p1  ;;  %p3340_p11 = por %p3339_p7, %p3338_p5 }
  0xef   : > { %p3341_p4 = pnand %p3340_p11, %p3334_p13 }
  0xf1   : > { %3344 = shalt.err (!%p3341_p4)
}
  0xf2   : > { %p5226_p0 = scmp.ne.s32.totalorder %s5196_s7, 0  ;;  %s5227_s21 = smov 4  }
  0xf3   : > { %s5228_s1 = smov 64   ;;  %s5229_s10 = sld [smem:[#allocation56_spill]] }
  0xf4   : > { %2939 = dma.hbm_to_vmem [thread:$0]  (!%p5226_p0), %s4123_s18, 2048, %s4126_s3, %s3961_s9, %s5199_s4, %s5228_s1, %s5227_s21  }
  0xf5   : > { %s457_s30 = scalar_lea.vmem [#allocation12], %s3931_s16  ;;  %s5231_s5 = sand.u32 1, %s3581_s14  }
  0xf6   : > { %s463_s26 = sshll.u32 %s457_s30, 4  ;;  %s4164_s17 = scalar_lea.sflag [#allocation13], %s5231_s5  ;;  %s4160_s26 = int_to_ptr.vmem [resolvable:$true] %s463_s26 }
  0xf9   : > { %s5230_s0 = smov %s5229_s10  ;;  %s4157_s15 = scalar_lea.hbm %s5229_s10, %s3935_s13 }
  0xfa   : > { %s3345_s24 = scalar_lea.hbm %s4157_s15, 2048  ;;  %s3350_s13 = scalar_lea.hbm %s5230_s0, 4096 }
  0xfb   : > { %p3346_p6 = scmp.ne.s32.totalorder %s4157_s15, %s3345_s24  ;;  %p3351_p8 = scmp.lt.u32.totalorder %s4157_s15, %s5230_s0 }
  0xfc   : > { %p3352_p2 = scmp.lt.u32.totalorder %s3350_s13, %s3345_s24  ;;  %p3354_p1 = scmp.lt.u32.totalorder %s3345_s24, %s4157_s15 }
  0xfd   : > { %p3348_p3 = pnand %p3346_p6, %p3967_p9 }
  0xfe   : > { %p3353_p12 = por %p3352_p2, %p3351_p8 }
  0xff   : > { %p3349_p10 = pneg %p3348_p3 }
 0x100   : > { %p3355_p13 = por %p3354_p1, %p3353_p12 }
 0x102   : > { %p3356_p5 = pnand %p3355_p13, %p3349_p10 }
 0x104   : > { %3359 = shalt.err (!%p3356_p5)
}
 0x105   : > { %s3360_s16 = scalar_lea.vmem %s4160_s26, 2048  ;;  %s3646_s22 = smov [#allocation12]  }
 0x106   : > { %p3361_p7 = scmp.ne.s32.totalorder %s4160_s26, %s3360_s16  ;;  %s3365_s10 = sshll.u32 %s3646_s22, 4  ;;  %s3366_s10 = int_to_ptr.vmem [resolvable:$false] %s3365_s10 }
 0x107   : > { %s3367_s30 = scalar_lea.vmem %s3366_s10, 4096  ;;  %p3368_p6 = scmp.lt.s32.totalorder %s4160_s26, %s3366_s10 }
 0x108   : > { %p3363_p11 = pnand %p3361_p7, %p3967_p9  ;;  %p3369_p3 = scmp.lt.s32.totalorder %s3367_s30, %s3360_s16 }
 0x10a   : > { %p3364_p4 = pneg %p3363_p11  ;;  %p3370_p8 = por %p3369_p3, %p3368_p6 }
 0x10c   : > { %p3371_p2 = pnand %p3370_p8, %p3364_p4 }
 0x10e   : > { %3374 = shalt.err (!%p3371_p2)
}
 0x10f   : > { %2942 = dma.hbm_to_vmem [thread:$0]  (!%p5226_p0), %s4157_s15, 2048, %s4160_s26, %s4164_s17, %s5199_s4, %s5228_s1, %s5227_s21  }
 0x110   : > { %s5232_s2 = sld [smem:[#allocation39_spill]] }
 0x116   : > { %p5233_p9 = scmp.ne.s32.totalorder %s5232_s2, 0 }
 0x118   : > { %475 = sbr.rel (%p5233_p9) target bundleno = 1048 (0x418), region = 48 }
 0x11f   : > { %s5234_s5 = sld [smem:[#allocation46_spill]]  ;;  %s477_s24 = sand.u32 1, %s3601_s19  }
 0x120   : > { %s2383_s9 = sshll.u32 %s477_s24, 8  ;;  %s478_s18 = scalar_lea.sflag [#allocation4], %s477_s24 }
 0x121   : > { %s4194_s13 = scalar_lea.vmem [#allocation3], %s2383_s9 }
 0x125   : > { %p5235_p10 = scmp.ne.s32.totalorder %s5234_s5, 0 }
 0x127   : > { %3536 = dma.done.wait (%p5235_p10), %s478_s18, 4096  }
 0x128   : > { %3538 = vsyncadd (%p5235_p10), %s478_s18, 4294963200  ;;  %s5236_s7 = sld [smem:[#allocation27_spill]]  ;;  %s5237_s3 = sld [smem:[#allocation34_spill]] }
 0x129   : > { %s4201_s12 = sand.u32 1, %s3796_s28  }
 0x12a   : > { %s487_s1 = scalar_lea.sflag [#allocation7], %s4201_s12 }
 0x12e   : > { %s488_s4 = sand.u32 1, %s5236_s7   ;;  %p5238_p0 = scmp.ne.s32.totalorder %s5237_s3, 0 }
 0x12f   : > { %s2384_s21 = sshll.u32 %s488_s4, 7 }
 0x130   : > { %s4205_s15 = scalar_lea.vmem [#allocation6], %s2384_s21 }
 0x131   : > { %3540 = dma.done.wait (%p5238_p0), %s487_s1, 4096  }
 0x132   : > { %3542 = vsyncadd (%p5238_p0), %s487_s1, 4294963200  ;;  %s5239_s26 = sld [smem:[#allocation26_spill]]  ;;  %s5240_s17 = sld [smem:[#allocation41_spill]] }
 0x133   : > { %s4212_s10 = scalar_lea.vmem [#allocation8], %s2384_s21  ;;  %s505_s28 = scalar_lea.sflag [#allocation10], %s4201_s12 }
 0x138   : > { %s506_s16 = sand.u32 1, %s5239_s26   ;;  %p5241_p12 = scmp.ne.s32.totalorder %s5240_s17, 0 }
 0x139   : > { %s2386_s22 = sshll.u32 %s506_s16, 7 }
 0x13a   : > { %s4215_s30 = scalar_lea.vmem [#allocation9], %s2386_s22 }
 0x13b   : > { %3544 = dma.done.wait (%p5241_p12), %s505_s28, 4096  }
 0x13c   : > { %3546 = vsyncadd (%p5241_p12), %s505_s28, 4294963200  ;;  %s4221_s2 = scalar_lea.vmem [#allocation11], %s2386_s22  ;;  %s523_s5 = scalar_lea.sflag [#allocation13], %s506_s16 }
 0x13d   : > { %s4223_s24 = scalar_lea.vmem [#allocation12], %s2386_s22 }
 0x13e   : > { %3548 = dma.done.wait (%p5241_p12), %s523_s5, 2048  }
 0x13f   : > { %3550 = vsyncadd (%p5241_p12), %s523_s5, 4294965248  ;;  %s5242_s9 = sld [smem:[#allocation25_spill]]  ;;  %s5243_s1 = sld [smem:[#allocation29_spill]] }
 0x145   : > { %s5144_s18 = sand.u32 1, %s5242_s9   ;;  %p2392_p1 = scmp.ne.s32.totalorder %s5243_s1, 0 }
 0x146   : > { %s2389_s7 = sshll.u32 %s5144_s18, 6  ;;  %v4240_v0 = vld [vmem:[%s4194_s13 + $0x20] sm:$0xff] (!%p2392_p1)  ;;  %v4243_v1 = vld [vmem:[%s4194_s13 + $0x28] sm:$0xff] (!%p2392_p1)  ;;  %v4258_v7 = vld [vmem:[%s4194_s13 + $0x30] sm:$0xff] (!%p2392_p1)  ;;  %s5244_s17 = sld [smem:[#allocation57_spill]] (!%p2392_p1) }
 0x147   : > { %s4232_s3 = scalar_lea.vmem [#allocation14], %s2389_s7  ;;  %s4234_s4 = scalar_lea.vmem [#allocation15], %s2389_s7  ;;  %v4246_v2 = vld [vmem:[%s4194_s13] sm:$0xff] (!%p2392_p1)  ;;  %v643_v3 = vmul.f32 (!%p2392_p1), %v4240_v0, %v4240_v0  ;;  %v644_v4 = vmul.f32 (!%p2392_p1), %v4243_v1, %v4243_v1  ;;  %v4253_v5 = vld [vmem:[%s4194_s13 + $0x8] sm:$0xff] (!%p2392_p1)  ;;  %v4261_v8 = vld [vmem:[%s4194_s13 + $0x38] sm:$0xff] (!%p2392_p1)  ;;  %v645_v10 = vmul.f32 (!%p2392_p1), %v4258_v7, %v4258_v7 }
 0x148   : > { %s4236_s21 = scalar_lea.vmem [#allocation17], %s2389_s7  ;;  %606 = sbr.rel (%p2392_p1) target bundleno = 529 (0x211), region = 76  ;;  %v639_v6 = vmul.f32 (!%p2392_p1), %v4246_v2, %v4246_v2  ;;  %v640_v9 = vmul.f32 (!%p2392_p1), %v4253_v5, %v4253_v5  ;;  %v646_v11 = vmul.f32 (!%p2392_p1), %v4261_v8, %v4261_v8  ;;  %v4270_v12 = vld [vmem:[%s4194_s13 + $0x10] sm:$0xff] (!%p2392_p1)  ;;  %v4273_v13 = vld [vmem:[%s4194_s13 + $0x18] sm:$0xff] (!%p2392_p1)  ;;  %v4286_v19 = vld [vmem:[%s4194_s13 + $0x40] sm:$0xff] (!%p2392_p1) }
 0x149   : > { %v4276_v14 = vld [vmem:[%s4194_s13 + $0x50] sm:$0xff] (!%p2392_p1)  ;;  %v677_v15 = vadd.f32 (!%p2392_p1), %v644_v4, %v643_v3  ;;  %v641_v16 = vmul.f32 (!%p2392_p1), %v4270_v12, %v4270_v12  ;;  %v642_v17 = vmul.f32 (!%p2392_p1), %v4273_v13, %v4273_v13  ;;  %v4283_v18 = vld [vmem:[%s4194_s13 + $0x58] sm:$0xff] (!%p2392_p1)  ;;  %v4289_v20 = vld [vmem:[%s4194_s13 + $0x48] sm:$0xff] (!%p2392_p1)  ;;  %v647_v26 = vmul.f32 (!%p2392_p1), %v4286_v19, %v4286_v19 }
 0x14a   : > { %v671_v21 = vadd.f32 (!%p2392_p1), %v640_v9, %v639_v6  ;;  %v680_v22 = vadd.f32 (!%p2392_p1), %v646_v11, %v645_v10  ;;  %v649_v23 = vmul.f32 (!%p2392_p1), %v4276_v14, %v4276_v14  ;;  %v650_v24 = vmul.f32 (!%p2392_p1), %v4283_v18, %v4283_v18  ;;  %v4300_v28 = vld [vmem:[%s4194_s13 + $0x70] sm:$0xff] (!%p2392_p1)  ;;  %v4303_v29 = vld [vmem:[%s4194_s13 + $0x78] sm:$0xff] (!%p2392_p1)  ;;  %v4306_v30 = vld [vmem:[%s4194_s13 + $0x60] sm:$0xff] (!%p2392_p1) }
 0x14b   : > { %678 = vadd.xlane.f32.xlu1 (!%p2392_p1), %v677_v15  ;;  %v674_v25 = vadd.f32 (!%p2392_p1), %v642_v17, %v641_v16  ;;  %v648_v27 = vmul.f32 (!%p2392_p1), %v4289_v20, %v4289_v20  ;;  %v4309_v31 = vld [vmem:[%s4194_s13 + $0x68] sm:$0xff] (!%p2392_p1)  ;;  %v653_v33 = vmul.f32 (!%p2392_p1), %v4300_v28, %v4300_v28  ;;  %v654_v34 = vmul.f32 (!%p2392_p1), %v4303_v29, %v4303_v29  ;;  %v4320_v38 = vld [vmem:[%s4194_s13 + $0x90] sm:$0xff] (!%p2392_p1)  ;;  %v4323_v39 = vld [vmem:[%s4194_s13 + $0x98] sm:$0xff] (!%p2392_p1) }
 0x14c   : > { %672 = vadd.xlane.f32.xlu0 (!%p2392_p1), %v671_v21  ;;  %v686_v32 = vadd.f32 (!%p2392_p1), %v650_v24, %v649_v23  ;;  %v651_v36 = vmul.f32 (!%p2392_p1), %v4306_v30, %v4306_v30  ;;  %v652_v37 = vmul.f32 (!%p2392_p1), %v4309_v31, %v4309_v31  ;;  %v4326_v40 = vld [vmem:[%s4194_s13 + $0x80] sm:$0xff] (!%p2392_p1)  ;;  %v4329_v41 = vld [vmem:[%s4194_s13 + $0x88] sm:$0xff] (!%p2392_p1)  ;;  %v657_v43 = vmul.f32 (!%p2392_p1), %v4320_v38, %v4320_v38  ;;  %v4340_v48 = vld [vmem:[%s4194_s13 + $0xb0] sm:$0xff] (!%p2392_p1) }
 0x14d   : > { %v683_v35 = vadd.f32 (!%p2392_p1), %v648_v27, %v647_v26  ;;  %v692_v42 = vadd.f32 (!%p2392_p1), %v654_v34, %v653_v33  ;;  %v658_v44 = vmul.f32 (!%p2392_p1), %v4323_v39, %v4323_v39  ;;  %v655_v46 = vmul.f32 (!%p2392_p1), %v4326_v40, %v4326_v40  ;;  %v4343_v49 = vld [vmem:[%s4194_s13 + $0xb8] sm:$0xff] (!%p2392_p1)  ;;  %v4346_v50 = vld [vmem:[%s4194_s13 + $0xa0] sm:$0xff] (!%p2392_p1)  ;;  %v4349_v51 = vld [vmem:[%s4194_s13 + $0xa8] sm:$0xff] (!%p2392_p1) }
 0x14e   : > { %v689_v45 = vadd.f32 (!%p2392_p1), %v652_v37, %v651_v36  ;;  %v656_v47 = vmul.f32 (!%p2392_p1), %v4329_v41, %v4329_v41  ;;  %v661_v53 = vmul.f32 (!%p2392_p1), %v4340_v48, %v4340_v48  ;;  %v662_v54 = vmul.f32 (!%p2392_p1), %v4343_v49, %v4343_v49  ;;  %v4360_v58 = vld [vmem:[%s4194_s13 + $0xd0] sm:$0xff] (!%p2392_p1)  ;;  %v4363_v59 = vld [vmem:[%s4194_s13 + $0xd8] sm:$0xff] (!%p2392_p1)  ;;  %v4366_v60 = vld [vmem:[%s4194_s13 + $0xc0] sm:$0xff] (!%p2392_p1) }
 0x14f   : > { %681 = vadd.xlane.f32.xlu1 %v680_v22  ;;  %v698_v52 = vadd.f32 %v658_v44, %v657_v43  ;;  %v659_v56 = vmul.f32 %v4346_v50, %v4346_v50  ;;  %v660_v57 = vmul.f32 %v4349_v51, %v4349_v51  ;;  %v4369_v61 = vld [vmem:[%s4194_s13 + $0xc8] sm:$0xff]  ;;  %v665_v63 = vmul.f32 %v4360_v58, %v4360_v58  ;;  %v4380_v10 = vld [vmem:[%s4194_s13 + $0xf0] sm:$0xff]  ;;  %v4383_v11 = vld [vmem:[%s4194_s13 + $0xf8] sm:$0xff] }
 0x150   : > { %675 = vadd.xlane.f32.xlu0 %v674_v25  ;;  %v695_v55 = vadd.f32 %v656_v47, %v655_v46  ;;  %v704_v62 = vadd.f32 %v662_v54, %v661_v53  ;;  %v666_v3 = vmul.f32 %v4363_v59, %v4363_v59  ;;  %v663_v6 = vmul.f32 %v4366_v60, %v4366_v60  ;;  %v4386_v15 = vld [vmem:[%s4194_s13 + $0xe0] sm:$0xff]  ;;  %v4389_v16 = vld [vmem:[%s4194_s13 + $0xe8] sm:$0xff] }
 0x151   : > { %v701_v4 = vadd.f32 %v660_v57, %v659_v56  ;;  %v664_v9 = vmul.f32 %v4369_v61, %v4369_v61  ;;  %v669_v21 = vmul.f32 %v4380_v10, %v4380_v10  ;;  %v670_v22 = vmul.f32 %v4383_v11, %v4383_v11 }
 0x152   : > { %v710_v17 = vadd.f32 %v666_v3, %v665_v63  ;;  %v667_v24 = vmul.f32 %v4386_v15, %v4386_v15  ;;  %v668_v25 = vmul.f32 %v4389_v16, %v4389_v16  ;;  %v802_v36 = vlaneseq }
 0x153   : > { %687 = vadd.xlane.f32.xlu1 %v686_v32  ;;  %v707_v23 = vadd.f32 %v664_v9, %v663_v6  ;;  %v716_v26 = vadd.f32 %v670_v22, %v669_v21 }
 0x154   : > { %684 = vadd.xlane.f32.xlu0 %v683_v35  ;;  %v713_v27 = vadd.f32 %v668_v25, %v667_v24  ;;  %v803_v47 = vshrl.u32 %v802_v36, 7 }
 0x156   : > { %v808_v63 = vsub.s32 1, %v803_v47 }
 0x157   : > { %693 = vadd.xlane.f32.xlu1 %v692_v42 }
 0x158   : > { %690 = vadd.xlane.f32.xlu0 %v689_v45 }
 0x15b   : > { %699 = vadd.xlane.f32.xlu1 %v698_v52 }
 0x15c   : > { %696 = vadd.xlane.f32.xlu0 %v695_v55 }
 0x15f   : > { %705 = vadd.xlane.f32.xlu1 %v704_v62  ;;  %v804_v62 = vsub.s32 0, %v803_v47 }
 0x160   : > { %702 = vadd.xlane.f32.xlu0 %v701_v4  ;;  %v800_v4 = vld [vmem:[%s5244_s17] sm:$0x3] }
 0x161   : > { %v4402_v24 = vrot.slane %v800_v4, %v804_v62  ;;  %v4404_v25 = vrot.slane %v800_v4, %v808_v63 }
 0x163   : > { %711 = vadd.xlane.f32.xlu1 %v710_v17 }
 0x164   : > { %708 = vadd.xlane.f32.xlu0 %v707_v23 }
 0x167   : > { %717 = vadd.xlane.f32.xlu1 %v716_v26 }
 0x168   : > { %714 = vadd.xlane.f32.xlu0 %v713_v27 }
 0x1d8   : > { %v679_v32 = vpop.xlane.xlu1 %678 }
 0x1d9   : > { %v722_v33 = vmul.f32 0.00390625, %v679_v32  ;;  %v673_v34 = vpop.xlane.xlu0 %672 }
 0x1da   : > { %v720_v35 = vmul.f32 0.00390625, %v673_v34 }
 0x1db   : > { %v738_v37 = vadd.f32 1e-06, %v722_v33 }
 0x1dc   : > { %v736_v42 = vadd.f32 1e-06, %v720_v35  ;;  %v682_v43 = vpop.xlane.xlu1 %681 }
 0x1dd   : > { %3115 = vrsqrt.f32 %v738_v37  ;;  %v723_v44 = vmul.f32 0.00390625, %v682_v43  ;;  %v676_v45 = vpop.xlane.xlu0 %675 }
 0x1de   : > { %3117 = vrsqrt.f32 %v736_v42  ;;  %v721_v46 = vmul.f32 0.00390625, %v676_v45 }
 0x1df   : > { %v739_v52 = vadd.f32 1e-06, %v723_v44 }
 0x1e0   : > { %v737_v53 = vadd.f32 1e-06, %v721_v46  ;;  %v688_v54 = vpop.xlane.xlu1 %687 }
 0x1e1   : > { %3119 = vrsqrt.f32 %v739_v52  ;;  %v725_v55 = vmul.f32 0.00390625, %v688_v54  ;;  %v685_v56 = vpop.xlane.xlu0 %684 }
 0x1e2   : > { %3121 = vrsqrt.f32 %v737_v53  ;;  %v724_v57 = vmul.f32 0.00390625, %v685_v56 }
 0x1e3   : > { %v741_v3 = vadd.f32 1e-06, %v725_v55 }
 0x1e4   : > { %v740_v6 = vadd.f32 1e-06, %v724_v57  ;;  %v694_v9 = vpop.xlane.xlu1 %693 }
 0x1e5   : > { %3123 = vrsqrt.f32 %v741_v3  ;;  %v727_v17 = vmul.f32 0.00390625, %v694_v9  ;;  %v691_v21 = vpop.xlane.xlu0 %690 }
 0x1e6   : > { %3125 = vrsqrt.f32 %v740_v6  ;;  %v726_v22 = vmul.f32 0.00390625, %v691_v21 }
 0x1e7   : > { %v3116_v23 = vpop.eup %3115  ;;  %v743_v26 = vadd.f32 1e-06, %v727_v17 }
 0x1e8   : > { %v3118_v27 = vpop.eup %3117  ;;  %v772_v32 = vmul.f32 %v3116_v23, %v4240_v0  ;;  %v773_v33 = vmul.f32 %v3116_v23, %v4243_v1  ;;  %v742_v34 = vadd.f32 1e-06, %v726_v22  ;;  %v700_v35 = vpop.xlane.xlu1 %699 }
 0x1e9   : > { %v768_v36 = vmul.f32 %v3118_v27, %v4246_v2  ;;  %3127 = vrsqrt.f32 %v743_v26  ;;  %v729_v37 = vmul.f32 0.00390625, %v700_v35  ;;  %v697_v42 = vpop.xlane.xlu0 %696  ;;  %v769_v47 = vmul.f32 %v3118_v27, %v4253_v5 }
 0x1ea   : > { %3129 = vrsqrt.f32 %v742_v34  ;;  %v728_v43 = vmul.f32 0.00390625, %v697_v42  ;;  %v816_v45 = vmul.f32 %v4402_v24, %v772_v32  ;;  %v817_v46 = vmul.f32 %v4404_v25, %v773_v33 }
 0x1eb   : > { %v3120_v44 = vpop.eup %3119  ;;  %v745_v52 = vadd.f32 1e-06, %v729_v37  ;;  %v812_v1 = vmul.f32 %v4402_v24, %v768_v36 }
 0x1ec   : > { %v3122_v0 = vpop.eup %3121  ;;  %v774_v53 = vmul.f32 %v3120_v44, %v4258_v7  ;;  %v775_v2 = vmul.f32 %v3120_v44, %v4261_v8  ;;  %v744_v54 = vadd.f32 1e-06, %v728_v43  ;;  %v706_v55 = vpop.xlane.xlu1 %705  ;;  %v813_v7 = vmul.f32 %v4404_v25, %v769_v47 }
 0x1ed   : > { %v770_v56 = vmul.f32 %v3122_v0, %v4270_v12  ;;  %v771_v57 = vmul.f32 %v3122_v0, %v4273_v13  ;;  %3131 = vrsqrt.f32 %v745_v52  ;;  %v731_v62 = vmul.f32 0.00390625, %v706_v55  ;;  %v703_v63 = vpop.xlane.xlu0 %702 }
 0x1ee   : > { %v818_v3 = vmul.f32 %v4402_v24, %v774_v53  ;;  %v819_v5 = vmul.f32 %v4404_v25, %v775_v2  ;;  %3133 = vrsqrt.f32 %v744_v54  ;;  %v730_v4 = vmul.f32 0.00390625, %v703_v63 }
 0x1ef   : > { %v3124_v6 = vpop.eup %3123  ;;  %v814_v8 = vmul.f32 %v4402_v24, %v770_v56  ;;  %v815_v9 = vmul.f32 %v4404_v25, %v771_v57  ;;  %v747_v17 = vadd.f32 1e-06, %v731_v62 }
 0x1f0   : > { %v3126_v12 = vpop.eup %3125  ;;  %v846_v21 = vpack.c.bf16 %v818_v3, %v816_v45  ;;  %v847_v13 = vpack.c.bf16 %v819_v5, %v817_v46  ;;  %v778_v22 = vmul.f32 %v3124_v6, %v4276_v14  ;;  %v779_v23 = vmul.f32 %v3124_v6, %v4283_v18  ;;  %v712_v26 = vpop.xlane.xlu1 %711 }
 0x1f1   : > { %v844_v27 = vpack.c.bf16 %v814_v8, %v812_v1  ;;  %v845_v32 = vpack.c.bf16 %v815_v9, %v813_v7  ;;  %v776_v33 = vmul.f32 %v3126_v12, %v4286_v19  ;;  %v777_v34 = vmul.f32 %v3126_v12, %v4289_v20  ;;  %v709_v35 = vpop.xlane.xlu0 %708 }
 0x1f2   : > { %862 = vst [vmem:[#allocation2 + $0x10] sm:$0xff] %v846_v21  ;;  %863 = vst [vmem:[#allocation2 + $0x18] sm:$0xff] %v847_v13  ;;  %v822_v36 = vmul.f32 %v4402_v24, %v778_v22  ;;  %v823_v37 = vmul.f32 %v4404_v25, %v779_v23  ;;  %3135 = vrsqrt.f32 %v747_v17  ;;  %v746_v42 = vadd.f32 1e-06, %v730_v4 }
 0x1f3   : > { %v3128_v43 = vpop.eup %3127  ;;  %860 = vst [vmem:[#allocation2] sm:$0xff] %v844_v27  ;;  %861 = vst [vmem:[#allocation2 + $0x8] sm:$0xff] %v845_v32  ;;  %v820_v14 = vmul.f32 %v4402_v24, %v776_v33  ;;  %v821_v18 = vmul.f32 %v4404_v25, %v777_v34  ;;  %v733_v44 = vmul.f32 0.00390625, %v712_v26  ;;  %v732_v19 = vmul.f32 0.00390625, %v709_v35 }
 0x1f4   : > { %v3130_v45 = vpop.eup %3129  ;;  %v782_v20 = vmul.f32 %v3128_v43, %v4300_v28  ;;  %v783_v46 = vmul.f32 %v3128_v43, %v4303_v29  ;;  %3137 = vrsqrt.f32 %v746_v42  ;;  %v718_v47 = vpop.xlane.xlu1 %717 }
 0x1f5   : > { %v848_v52 = vpack.c.bf16 %v822_v36, %v820_v14  ;;  %v849_v0 = vpack.c.bf16 %v823_v37, %v821_v18  ;;  %v780_v1 = vmul.f32 %v3130_v45, %v4306_v30  ;;  %v781_v53 = vmul.f32 %v3130_v45, %v4309_v31  ;;  %v715_v2 = vpop.xlane.xlu0 %714 }
 0x1f6   : > { %v826_v54 = vmul.f32 %v4402_v24, %v782_v20  ;;  %v827_v55 = vmul.f32 %v4404_v25, %v783_v46  ;;  %v749_v56 = vadd.f32 1e-06, %v733_v44  ;;  %v748_v57 = vadd.f32 1e-06, %v732_v19 }
 0x1f7   : > { %v3132_v62 = vpop.eup %3131  ;;  %864 = vst [vmem:[#allocation2 + $0x20] sm:$0xff] %v848_v52  ;;  %865 = vst [vmem:[#allocation2 + $0x28] sm:$0xff] %v849_v0  ;;  %v824_v28 = vmul.f32 %v4402_v24, %v780_v1  ;;  %v825_v29 = vmul.f32 %v4404_v25, %v781_v53  ;;  %v735_v63 = vmul.f32 0.00390625, %v718_v47  ;;  %v734_v3 = vmul.f32 0.00390625, %v715_v2 }
 0x1f8   : > { %v3134_v5 = vpop.eup %3133  ;;  %v786_v30 = vmul.f32 %v3132_v62, %v4320_v38  ;;  %v787_v31 = vmul.f32 %v3132_v62, %v4323_v39  ;;  %3139 = vrsqrt.f32 %v749_v56 }
 0x1f9   : > { %v850_v4 = vpack.c.bf16 %v826_v54, %v824_v28  ;;  %v851_v6 = vpack.c.bf16 %v827_v55, %v825_v29  ;;  %v784_v7 = vmul.f32 %v3134_v5, %v4326_v40  ;;  %v785_v8 = vmul.f32 %v3134_v5, %v4329_v41 }
 0x1fa   : > { %v830_v9 = vmul.f32 %v4402_v24, %v786_v30  ;;  %v831_v17 = vmul.f32 %v4404_v25, %v787_v31  ;;  %3141 = vrsqrt.f32 %v748_v57  ;;  %v751_v12 = vadd.f32 1e-06, %v735_v63 }
 0x1fb   : > { %866 = vst [vmem:[#allocation2 + $0x30] sm:$0xff] %v850_v4  ;;  %867 = vst [vmem:[#allocation2 + $0x38] sm:$0xff] %v851_v6  ;;  %v828_v21 = vmul.f32 %v4402_v24, %v784_v7  ;;  %v829_v38 = vmul.f32 %v4404_v25, %v785_v8  ;;  %v750_v39 = vadd.f32 1e-06, %v734_v3 }
 0x1fc   : > { %v3136_v13 = vpop.eup %3135  ;;  %3143 = vrsqrt.f32 %v751_v12 }
 0x1fd   : > { %v852_v22 = vpack.c.bf16 %v830_v9, %v828_v21  ;;  %v853_v23 = vpack.c.bf16 %v831_v17, %v829_v38  ;;  %v790_v40 = vmul.f32 %v3136_v13, %v4340_v48  ;;  %v791_v41 = vmul.f32 %v3136_v13, %v4343_v49 }
 0x1fe   : > { %v3138_v26 = vpop.eup %3137  ;;  %3145 = vrsqrt.f32 %v750_v39 }
 0x1ff   : > { %868 = vst [vmem:[#allocation2 + $0x40] sm:$0xff] %v852_v22  ;;  %869 = vst [vmem:[#allocation2 + $0x48] sm:$0xff] %v853_v23  ;;  %v834_v27 = vmul.f32 %v4402_v24, %v790_v40  ;;  %v835_v32 = vmul.f32 %v4404_v25, %v791_v41  ;;  %v788_v33 = vmul.f32 %v3138_v26, %v4346_v50 }
 0x200   : > { %v789_v34 = vmul.f32 %v3138_v26, %v4349_v51 }
 0x201   : > { %v832_v35 = vmul.f32 %v4402_v24, %v788_v33 }
 0x202   : > { %v833_v36 = vmul.f32 %v4404_v25, %v789_v34  ;;  %v3140_v37 = vpop.eup %3139 }
 0x203   : > { %v854_v48 = vpack.c.bf16 %v834_v27, %v832_v35  ;;  %v794_v49 = vmul.f32 %v3140_v37, %v4360_v58  ;;  %v795_v43 = vmul.f32 %v3140_v37, %v4363_v59 }
 0x204   : > { %v855_v42 = vpack.c.bf16 %v835_v32, %v833_v36  ;;  %v3142_v14 = vpop.eup %3141 }
 0x205   : > { %870 = vst [vmem:[#allocation2 + $0x50] sm:$0xff] %v854_v48  ;;  %v838_v18 = vmul.f32 %v4402_v24, %v794_v49  ;;  %v839_v50 = vmul.f32 %v4404_v25, %v795_v43  ;;  %v792_v51 = vmul.f32 %v3142_v14, %v4366_v60  ;;  %v793_v44 = vmul.f32 %v3142_v14, %v4369_v61 }
 0x206   : > { %871 = vst [vmem:[#allocation2 + $0x58] sm:$0xff] %v855_v42  ;;  %v3144_v19 = vpop.eup %3143 }
 0x207   : > { %v836_v45 = vmul.f32 %v4402_v24, %v792_v51  ;;  %v837_v20 = vmul.f32 %v4404_v25, %v793_v44  ;;  %v798_v58 = vmul.f32 %v3144_v19, %v4380_v10  ;;  %v799_v59 = vmul.f32 %v3144_v19, %v4383_v11 }
 0x208   : > { %v3146_v46 = vpop.eup %3145 }
 0x209   : > { %v856_v47 = vpack.c.bf16 %v838_v18, %v836_v45  ;;  %v857_v52 = vpack.c.bf16 %v839_v50, %v837_v20  ;;  %v842_v0 = vmul.f32 %v4402_v24, %v798_v58  ;;  %v843_v1 = vmul.f32 %v4404_v25, %v799_v59 }
 0x20a   : > { %v796_v60 = vmul.f32 %v3146_v46, %v4386_v15  ;;  %v797_v61 = vmul.f32 %v3146_v46, %v4389_v16 }
 0x20b   : > { %872 = vst [vmem:[#allocation2 + $0x60] sm:$0xff] %v856_v47  ;;  %873 = vst [vmem:[#allocation2 + $0x68] sm:$0xff] %v857_v52 }
 0x20c   : > { %v840_v53 = vmul.f32 %v4402_v24, %v796_v60  ;;  %v841_v2 = vmul.f32 %v4404_v25, %v797_v61 }
 0x20e   : > { %v858_v10 = vpack.c.bf16 %v842_v0, %v840_v53  ;;  %v859_v54 = vpack.c.bf16 %v843_v1, %v841_v2 }
 0x210   : > { %874 = vst [vmem:[#allocation2 + $0x70] sm:$0xff] %v858_v10  ;;  %875 = vst [vmem:[#allocation2 + $0x78] sm:$0xff] %v859_v54 }
 0x211 PF: > { %v3147_v11 = vld [vmem:[%s4215_s30 + $0x40] sm:$0xff]   ;;  %v3149_v16 = vld [vmem:[%s4215_s30 + $0x48] sm:$0xff]   ;;  %v3151_v25 = vld [vmem:[%s4215_s30 + $0x50] sm:$0xff]   ;;  %s5145_s16 = smov 64   ;;  %s5248_s22 = sld [smem:[#allocation30_spill]] }
 0x212   : > { %v3148_v15 = vld [vmem:[%s4215_s30] sm:$0xff]   ;;  %2698 = vmatprep.subr.bf16.mxu0 %v3147_v11  ;;  %2890 = vmatprep.subr.bf16.mxu1 %v3147_v11  ;;  %v3150_v24 = vld [vmem:[%s4215_s30 + $0x8] sm:$0xff]   ;;  %v3152_v55 = vld [vmem:[%s4215_s30 + $0x10] sm:$0xff]   ;;  %s5249_s28 = sld [smem:[#allocation29_spill]]  ;;  %s2063_s13 = sshll.u32 %s4234_s4, 4  ;;  %s4910_s13 = int_to_ptr.vmem [resolvable:$true] %s2063_s13 }
 0x213   : > { %2699 = vmatpush3.bf16.msra.mxu0 %v3148_v15  ;;  %2898 = vmatpush3.bf16.msra.mxu1 %v3148_v15  ;;  %v3153_v56 = vld [vmem:[%s4215_s30 + $0x58] sm:$0xff]   ;;  %v3155_v62 = vld [vmem:[%s4215_s30 + $0x60] sm:$0xff]   ;;  %v3157_v29 = vld [vmem:[%s4215_s30 + $0x68] sm:$0xff]   ;;  %s5258_s17 = sld [smem:[#allocation58_spill]]  ;;  %s3375_s0 = scalar_lea.vmem %s4910_s13, 1024 }
 0x214   : > { %2700 = vmatprep.subr.bf16.mxu0 %v3149_v16  ;;  %2891 = vmatprep.subr.bf16.mxu1 %v3149_v16  ;;  %v3154_v57 = vld [vmem:[%s4215_s30 + $0x18] sm:$0xff]   ;;  %v3156_v28 = vld [vmem:[%s4215_s30 + $0x20] sm:$0xff]   ;;  %v4481_v63 = vld [vmem:[#allocation2 + $0x8] sm:$0xff]  ;;  %p3376_p13 = scmp.ne.s32.totalorder %s4910_s13, %s3375_s0  ;;  %p5260_p5 = scmp.ne.s32.totalorder %s5208_s23, 0 }
 0x215   : > { %v4483_v3 = vld [vmem:[#allocation2 + $0x48] sm:$0xff]  ;;  %1084 = vmatprep.mubr.bf16.mxu0 %v4481_v63  ;;  %v3159_v30 = vld [vmem:[%s4215_s30 + $0x70] sm:$0xff]   ;;  %v3161_v4 = vld [vmem:[%s4215_s30 + $0x78] sm:$0xff]  }
 0x216   : > { %1116 = vmatprep.mubr.bf16.mxu1 %v4483_v3  ;;  %v3158_v5 = vld [vmem:[%s4215_s30 + $0x28] sm:$0xff]   ;;  %v3160_v31 = vld [vmem:[%s4215_s30 + $0x30] sm:$0xff]   ;;  %v3162_v6 = vld [vmem:[%s4215_s30 + $0x38] sm:$0xff]   ;;  %s5250_s30 = sld [smem:[#allocation31_spill]]  ;;  %p3377_p7 = pnand %p3376_p13, %p5260_p5 }
 0x217   : > { %2701 = vmatpush3.bf16.msra.mxu0 %v3150_v24  ;;  %2899 = vmatpush3.bf16.msra.mxu1 %v3150_v24  ;;  %v3163_v7 = vld [vmem:[%s4221_s2 + $0x40] sm:$0xff]   ;;  %v3165_v12 = vld [vmem:[%s4221_s2 + $0x48] sm:$0xff]   ;;  %v4499_v21 = vld [vmem:[#allocation2 + $0x18] sm:$0xff] }
 0x218   : > { %2702 = vmatprep.subr.bf16.mxu0 %v3151_v25  ;;  %2892 = vmatprep.subr.bf16.mxu1 %v3151_v25  ;;  %v4493_v8 = vld [vmem:[#allocation2] sm:$0xff]  ;;  %v4501_v38 = vld [vmem:[#allocation2 + $0x58] sm:$0xff]  ;;  %v3166_v39 = vld [vmem:[%s4221_s2 + $0x8] sm:$0xff]   ;;  %s2493_s5 = sshll.u32 %s5249_s28, 5  ;;  %p3378_p11 = pneg %p3377_p7 }
 0x219   : > { %v4495_v9 = vld [vmem:[#allocation2 + $0x40] sm:$0xff]  ;;  %v3167_v13 = vld [vmem:[%s4221_s2 + $0x50] sm:$0xff]   ;;  %v3169_v41 = vld [vmem:[%s4221_s2 + $0x58] sm:$0xff]   ;;  %s5259_s18 = smov %s5258_s17 }
 0x21a   : > { %v3164_v17 = vld [vmem:[%s4221_s2] sm:$0xff]   ;;  %v4509_v22 = vld [vmem:[#allocation2 + $0x10] sm:$0xff]  ;;  %v4515_v26 = vld [vmem:[#allocation2 + $0x28] sm:$0xff] }
 0x21b   : > { %2703 = vmatpush3.bf16.msra.mxu0 %v3152_v55  ;;  %2900 = vmatpush3.bf16.msra.mxu1 %v3152_v55  ;;  %v4511_v23 = vld [vmem:[#allocation2 + $0x50] sm:$0xff]  ;;  %v3179_v27 = vld [vmem:[%s4223_s24 + $0x40] sm:$0xff]   ;;  %v4519_v33 = vld [vmem:[#allocation2 + $0x68] sm:$0xff] }
 0x21c   : > { %2704 = vmatprep.subr.bf16.mxu0 %v3153_v56  ;;  %2893 = vmatprep.subr.bf16.mxu1 %v3153_v56  ;;  %v3168_v40 = vld [vmem:[%s4221_s2 + $0x10] sm:$0xff]   ;;  %v3180_v32 = vld [vmem:[%s4223_s24] sm:$0xff]   ;;  %v3170_v34 = vld [vmem:[%s4221_s2 + $0x18] sm:$0xff]   ;;  %s2494_s9 = sshll.u32 %s5250_s30, 6  ;;  %s2043_s30 = sshll.u32 %s4232_s3, 4  ;;  %s4925_s30 = int_to_ptr.vmem [resolvable:$true] %s2043_s30 }
 0x21d   : > { %v3181_v35 = vld [vmem:[%s4223_s24 + $0x48] sm:$0xff]   ;;  %v3183_v37 = vld [vmem:[%s4223_s24 + $0x50] sm:$0xff]   ;;  %v3171_v48 = vld [vmem:[%s4221_s2 + $0x60] sm:$0xff]  }
 0x21e   : > { %v3182_v36 = vld [vmem:[%s4223_s24 + $0x8] sm:$0xff]   ;;  %v4530_v42 = vld [vmem:[#allocation2 + $0x20] sm:$0xff]  ;;  %v883_v18 = vld [vmem:[#allocation2 + $0x38] sm:$0xff] }
 0x21f   : > { %2705 = vmatpush3.bf16.msra.mxu0 %v3154_v57  ;;  %2901 = vmatpush3.bf16.msra.mxu1 %v3154_v57  ;;  %v4532_v49 = vld [vmem:[#allocation2 + $0x60] sm:$0xff]  ;;  %v3173_v14 = vld [vmem:[%s4221_s2 + $0x68] sm:$0xff]   ;;  %v4536_v50 = vld [vmem:[#allocation2 + $0x78] sm:$0xff] }
 0x220   : > { %2706 = vmatprep.subr.bf16.mxu0 %v3155_v62  ;;  %2894 = vmatprep.subr.bf16.mxu1 %v3155_v62  ;;  %v3172_v43 = vld [vmem:[%s4221_s2 + $0x20] sm:$0xff]   ;;  %v3184_v51 = vld [vmem:[%s4223_s24 + $0x10] sm:$0xff]   ;;  %v3185_v44 = vld [vmem:[%s4223_s24 + $0x58] sm:$0xff]  }
 0x221   : > { %v3174_v19 = vld [vmem:[%s4221_s2 + $0x28] sm:$0xff]   ;;  %v3175_v45 = vld [vmem:[%s4221_s2 + $0x70] sm:$0xff]   ;;  %v3186_v20 = vld [vmem:[%s4223_s24 + $0x18] sm:$0xff]  }
 0x222   : > { %v882_v58 = vld [vmem:[#allocation2 + $0x30] sm:$0xff]  ;;  %v3177_v47 = vld [vmem:[%s4221_s2 + $0x78] sm:$0xff]   ;;  %v3187_v52 = vld [vmem:[%s4223_s24 + $0x60] sm:$0xff]  }
 0x223   : > { %2707 = vmatpush3.bf16.msra.mxu0 %v3156_v28  ;;  %2902 = vmatpush3.bf16.msra.mxu1 %v3156_v28  ;;  %v890_v59 = vld [vmem:[#allocation2 + $0x70] sm:$0xff]  ;;  %v3188_v0 = vld [vmem:[%s4223_s24 + $0x20] sm:$0xff]   ;;  %v3189_v1 = vld [vmem:[%s4223_s24 + $0x68] sm:$0xff]  }
 0x224   : > { %2708 = vmatprep.subr.bf16.mxu0 %v3157_v29  ;;  %2895 = vmatprep.subr.bf16.mxu1 %v3157_v29  ;;  %v3176_v46 = vld [vmem:[%s4221_s2 + $0x30] sm:$0xff]   ;;  %v3178_v60 = vld [vmem:[%s4221_s2 + $0x38] sm:$0xff]   ;;  %v3190_v61 = vld [vmem:[%s4223_s24 + $0x28] sm:$0xff]   ;;  %s2492_s2 = sshll.u32 %s5248_s22, 4  ;;  %s5252_s22 = sld [smem:[#allocation59_spill]] }
 0x225   : > { %v3191_v53 = vld [vmem:[%s4223_s24 + $0x70] sm:$0xff]   ;;  %v3193_v10 = vld [vmem:[%s4223_s24 + $0x78] sm:$0xff]  }
 0x226   : > { %v3192_v2 = vld [vmem:[%s4223_s24 + $0x30] sm:$0xff]   ;;  %v3194_v54 = vld [vmem:[%s4223_s24 + $0x38] sm:$0xff]   ;;  %s2038_s24 = sadd.s32 %s2493_s5, %s2492_s2  ;;  %s3648_s2 = smov [#allocation15]  }
 0x227   : > { %2709 = vmatpush3.bf16.msra.mxu0 %v3158_v5  ;;  %2903 = vmatpush3.bf16.msra.mxu1 %v3158_v5  ;;  %s2040_s7 = sadd.s32 %s2494_s9, %s2038_s24  ;;  %s3379_s5 = sshll.u32 %s3648_s2, 4  ;;  %s3380_s5 = int_to_ptr.vmem [resolvable:$false] %s3379_s5 }
 0x228   : > { %2710 = vmatprep.subr.bf16.mxu0 %v3159_v30  ;;  %2896 = vmatprep.subr.bf16.mxu1 %v3159_v30  ;;  %s2495_s1 = sshll.u32 %s2040_s7, 6  ;;  %p3382_p4 = scmp.lt.s32.totalorder %s4910_s13, %s3380_s5 }
 0x22a   : > { %s5253_s28 = smov %s5252_s22 }
 0x22b   : > { %2711 = vmatpush3.bf16.msra.mxu0 %v3160_v31  ;;  %2904 = vmatpush3.bf16.msra.mxu1 %v3160_v31 }
 0x22c   : > { %2712 = vmatprep.subr.bf16.mxu0 %v3161_v4  ;;  %2897 = vmatprep.subr.bf16.mxu1 %v3161_v4 }
 0x22f   : > { %2713 = vmatpush3.bf16.msra.mxu0 %v3162_v6  ;;  %2905 = vmatpush3.bf16.msra.mxu1 %v3162_v6 }
 0x230   : > { %2762 = vmatprep.subr.bf16.mxu1 %v3163_v7  ;;  %2826 = vmatprep.subr.bf16.mxu0 %v3179_v27 }
 0x232   : > { %1085 = vmatmul.mubr.bf16.vlgmr.msra.gmra.mrb[0].mxu0 %v4493_v8  ;;  %1117 = vmatmul.mubr.bf16.vlgmr.msra.gmra.mrb[0].mxu1 %v4495_v9 }
 0x233   : > { %2763 = vmatpush3.bf16.msra.mxu1 %v3164_v17  ;;  %1092 = vmatprep.mubr.bf16.mxu0 %v4499_v21 }
 0x234   : > { %2764 = vmatprep.subr.bf16.mxu1 %v3165_v12  ;;  %1124 = vmatprep.mubr.bf16.mxu1 %v4501_v38 }
 0x235   : > { %2827 = vmatpush3.bf16.msra.mxu0 %v3180_v32 }
 0x236   : > { %2828 = vmatprep.subr.bf16.mxu0 %v3181_v35 }
 0x237   : > { %2765 = vmatpush3.bf16.msra.mxu1 %v3166_v39 }
 0x238   : > { %2766 = vmatprep.subr.bf16.mxu1 %v3167_v13 }
 0x239   : > { %2829 = vmatpush3.bf16.msra.mxu0 %v3182_v36 }
 0x23a   : > { %1093 = vmatmul.mubr.bf16.gmra.mrb[4].mxu0 %v4509_v22  ;;  %1125 = vmatmul.mubr.bf16.gmra.mrb[4].mxu1 %v4511_v23 }
 0x23b   : > { %2767 = vmatpush3.bf16.msra.mxu1 %v3168_v40  ;;  %1100 = vmatprep.mubr.bf16.mxu0 %v4515_v26 }
 0x23c   : > { %2768 = vmatprep.subr.bf16.mxu1 %v3169_v41  ;;  %1132 = vmatprep.mubr.bf16.mxu1 %v4519_v33 }
 0x23d   : > { %2830 = vmatprep.subr.bf16.mxu0 %v3183_v37 }
 0x23e   : > { %2831 = vmatpush3.bf16.msra.mxu0 %v3184_v51 }
 0x23f   : > { %2769 = vmatpush3.bf16.msra.mxu1 %v3170_v34  ;;  %2832 = vmatprep.subr.bf16.mxu0 %v3185_v44 }
 0x240   : > { %2770 = vmatprep.subr.bf16.mxu1 %v3171_v48 }
 0x242   : > { %1101 = vmatmul.mubr.bf16.gmra.mrb[8].mxu0 %v4530_v42  ;;  %1133 = vmatmul.mubr.bf16.gmra.mrb[8].mxu1 %v4532_v49 }
 0x243   : > { %2771 = vmatpush3.bf16.msra.mxu1 %v3172_v43  ;;  %1108 = vmatprep.mubr.bf16.mxu0 %v883_v18 }
 0x244   : > { %2772 = vmatprep.subr.bf16.mxu1 %v3173_v14  ;;  %1140 = vmatprep.mubr.bf16.mxu1 %v4536_v50 }
 0x245   : > { %2833 = vmatpush3.bf16.msra.mxu0 %v3186_v20 }
 0x246   : > { %2834 = vmatprep.subr.bf16.mxu0 %v3187_v52 }
 0x247   : > { %2773 = vmatpush3.bf16.msra.mxu1 %v3174_v19 }
 0x248   : > { %2774 = vmatprep.subr.bf16.mxu1 %v3175_v45 }
 0x249   : > { %2835 = vmatpush3.bf16.msra.mxu0 %v3188_v0 }
 0x24a   : > { %1109 = vmatmul.mubr.bf16.gmra.mrb[12].mxu0 %v882_v58  ;;  %1141 = vmatmul.mubr.bf16.gmra.mrb[12].mxu1 %v890_v59 }
 0x24b   : > { %2775 = vmatpush3.bf16.msra.mxu1 %v3176_v46  ;;  %1405 = vmatprep.mubr.bf16.mxu1 %v4481_v63 }
 0x24c   : > { %2776 = vmatprep.subr.bf16.mxu1 %v3177_v47  ;;  %1710 = vmatprep.mubr.bf16.mxu0 %v4481_v63 }
 0x24d   : > { %2836 = vmatprep.subr.bf16.mxu0 %v3189_v1 }
 0x24e   : > { %2837 = vmatpush3.bf16.msra.mxu0 %v3190_v61 }
 0x24f   : > { %2777 = vmatpush3.bf16.msra.mxu1 %v3178_v60  ;;  %2838 = vmatprep.subr.bf16.mxu0 %v3191_v53 }
 0x252   : > { %1406 = vmatmul.mubr.bf16.vlgmr.msra.gmra.mrb[16].mxu1 %v4493_v8  ;;  %2839 = vmatpush3.bf16.msra.mxu0 %v3192_v2 }
 0x253   : > { %1413 = vmatprep.mubr.bf16.mxu1 %v4499_v21  ;;  %2840 = vmatprep.subr.bf16.mxu0 %v3193_v10 }
 0x256   : > { %2841 = vmatpush3.bf16.msra.mxu0 %v3194_v54 }
 0x259   : > { %1711 = vmatmul.mubr.bf16.vlgmr.msra.gmra.mrb[16].mxu0 %v4493_v8 }
 0x25a   : > { %1414 = vmatmul.mubr.bf16.gmra.mrb[20].mxu1 %v4509_v22  ;;  %1718 = vmatprep.mubr.bf16.mxu0 %v4499_v21 }
 0x25b   : > { %1421 = vmatprep.mubr.bf16.mxu1 %v4515_v26 }
 0x261   : > { %1719 = vmatmul.mubr.bf16.gmra.mrb[20].mxu0 %v4509_v22 }
 0x262   : > { %1422 = vmatmul.mubr.bf16.gmra.mrb[24].mxu1 %v4530_v42  ;;  %1726 = vmatprep.mubr.bf16.mxu0 %v4515_v26 }
 0x263   : > { %1429 = vmatprep.mubr.bf16.mxu1 %v883_v18 }
 0x269   : > { %1727 = vmatmul.mubr.bf16.gmra.mrb[24].mxu0 %v4530_v42 }
 0x26a   : > { %1430 = vmatmul.mubr.bf16.gmra.mrb[28].mxu1 %v882_v58  ;;  %1734 = vmatprep.mubr.bf16.mxu0 %v883_v18 }
 0x26b   : > { %1437 = vmatprep.mubr.bf16.mxu1 %v4483_v3 }
 0x271   : > { %1735 = vmatmul.mubr.bf16.gmra.mrb[28].mxu0 %v882_v58 }
 0x272   : > { %1438 = vmatmul.mubr.bf16.gmra.mrb[32].mxu1 %v4495_v9  ;;  %1742 = vmatprep.mubr.bf16.mxu0 %v4483_v3 }
 0x273   : > { %1445 = vmatprep.mubr.bf16.mxu1 %v4501_v38 }
 0x279   : > { %1743 = vmatmul.mubr.bf16.gmra.mrb[32].mxu0 %v4495_v9 }
 0x27a   : > { %1446 = vmatmul.mubr.bf16.gmra.mrb[36].mxu1 %v4511_v23  ;;  %1750 = vmatprep.mubr.bf16.mxu0 %v4501_v38 }
 0x27b   : > { %1453 = vmatprep.mubr.bf16.mxu1 %v4519_v33 }
 0x281   : > { %1751 = vmatmul.mubr.bf16.gmra.mrb[36].mxu0 %v4511_v23 }
 0x282   : > { %1454 = vmatmul.mubr.bf16.gmra.mrb[40].mxu1 %v4532_v49  ;;  %1758 = vmatprep.mubr.bf16.mxu0 %v4519_v33 }
 0x283   : > { %1461 = vmatprep.mubr.bf16.mxu1 %v4536_v50 }
 0x289   : > { %1759 = vmatmul.mubr.bf16.gmra.mrb[40].mxu0 %v4532_v49 }
 0x28a   : > { %1462 = vmatmul.mubr.bf16.gmra.mrb[44].mxu1 %v890_v59  ;;  %1766 = vmatprep.mubr.bf16.mxu0 %v4536_v50 }
 0x291   : > { %1767 = vmatmul.mubr.bf16.gmra.mrb[44].mxu0 %v890_v59 }
 0x305   : > { %v2714_v11 = vpop.f32.mrb[0].mxu0  ;;  %v2738_v15 = vpop.f32.mrb[0].mxu1 }
 0x306   : > { %v2715_v16 = vpop.f32.mrb[1].mxu0  ;;  %v2739_v24 = vpop.f32.mrb[1].mxu1 }
 0x307   : > { %v2716_v25 = vadd.f32 %v2715_v16, %v2714_v11  ;;  %v2740_v55 = vadd.f32 %v2739_v24, %v2738_v15  ;;  %v2717_v56 = vpop.f32.mrb[2].mxu0  ;;  %v2741_v57 = vpop.f32.mrb[2].mxu1 }
 0x308   : > { %v2718_v62 = vpop.f32.mrb[3].mxu0  ;;  %v2742_v28 = vpop.f32.mrb[3].mxu1 }
 0x309   : > { %v4583_v29 = vmul.f32 0.088388346, %v2716_v25  ;;  %v2719_v63 = vadd.f32 %v2718_v62, %v2717_v56  ;;  %v2743_v3 = vadd.f32 %v2742_v28, %v2741_v57  ;;  %v4589_v30 = vmul.f32 0.088388346, %v2740_v55 }
 0x30b   : > { %v4585_v5 = vmul.f32 0.088388346, %v2719_v63  ;;  %1181 = vrot.lane.b32.xlu0 %v4583_v29, %s5145_s16  ;;  %v4593_v8 = vmul.f32 0.088388346, %v2743_v3 }
 0x30d   : > { %v2720_v31 = vpop.f32.mrb[4].mxu0  ;;  %v2744_v4 = vpop.f32.mrb[4].mxu1  ;;  %1183 = vrot.lane.b32.xlu1 %v4585_v5, %s5145_s16 }
 0x30e   : > { %v2721_v6 = vpop.f32.mrb[5].mxu0  ;;  %v2745_v7 = vpop.f32.mrb[5].mxu1 }
 0x30f   : > { %v2722_v9 = vadd.f32 %v2721_v6, %v2720_v31  ;;  %v2746_v17 = vadd.f32 %v2745_v7, %v2744_v4  ;;  %v2723_v12 = vpop.f32.mrb[6].mxu0  ;;  %v2747_v21 = vpop.f32.mrb[6].mxu1  ;;  %1197 = vrot.lane.b32.xlu0 %v4589_v30, %s5145_s16 }
 0x310   : > { %v2724_v38 = vpop.f32.mrb[7].mxu0  ;;  %v2748_v39 = vpop.f32.mrb[7].mxu1 }
 0x311   : > { %v4597_v13 = vmul.f32 0.088388346, %v2722_v9  ;;  %v2725_v22 = vadd.f32 %v2724_v38, %v2723_v12  ;;  %v2749_v23 = vadd.f32 %v2748_v39, %v2747_v21  ;;  %1199 = vrot.lane.b32.xlu1 %v4593_v8, %s5145_s16  ;;  %v4605_v41 = vmul.f32 0.088388346, %v2746_v17 }
 0x313   : > { %v4601_v40 = vmul.f32 0.088388346, %v2725_v22  ;;  %1185 = vrot.lane.b32.xlu0 %v4597_v13, %s5145_s16  ;;  %v4609_v34 = vmul.f32 0.088388346, %v2749_v23 }
 0x315   : > { %v2726_v26 = vpop.f32.mrb[8].mxu0  ;;  %v2750_v27 = vpop.f32.mrb[8].mxu1  ;;  %1187 = vrot.lane.b32.xlu1 %v4601_v40, %s5145_s16 }
 0x316   : > { %v2727_v32 = vpop.f32.mrb[9].mxu0  ;;  %v2751_v33 = vpop.f32.mrb[9].mxu1 }
 0x317   : > { %v2728_v35 = vadd.f32 %v2727_v32, %v2726_v26  ;;  %v2752_v36 = vadd.f32 %v2751_v33, %v2750_v27  ;;  %v2729_v37 = vpop.f32.mrb[10].mxu0  ;;  %v2753_v48 = vpop.f32.mrb[10].mxu1  ;;  %1201 = vrot.lane.b32.xlu0 %v4605_v41, %s5145_s16 }
 0x318   : > { %v2730_v42 = vpop.f32.mrb[11].mxu0  ;;  %v2754_v49 = vpop.f32.mrb[11].mxu1 }
 0x319   : > { %v4613_v43 = vmul.f32 0.088388346, %v2728_v35  ;;  %v2731_v14 = vadd.f32 %v2730_v42, %v2729_v37  ;;  %v2755_v18 = vadd.f32 %v2754_v49, %v2753_v48  ;;  %1203 = vrot.lane.b32.xlu1 %v4609_v34, %s5145_s16  ;;  %v4621_v51 = vmul.f32 0.088388346, %v2752_v36 }
 0x31b   : > { %v4617_v50 = vmul.f32 0.088388346, %v2731_v14  ;;  %1189 = vrot.lane.b32.xlu0 %v4613_v43, %s5145_s16  ;;  %v4625_v58 = vmul.f32 0.088388346, %v2755_v18 }
 0x31d   : > { %v2732_v44 = vpop.f32.mrb[12].mxu0  ;;  %v2756_v19 = vpop.f32.mrb[12].mxu1  ;;  %1191 = vrot.lane.b32.xlu1 %v4617_v50, %s5145_s16 }
 0x31e   : > { %v2733_v45 = vpop.f32.mrb[13].mxu0  ;;  %v2757_v20 = vpop.f32.mrb[13].mxu1 }
 0x31f   : > { %v2734_v59 = vadd.f32 %v2733_v45, %v2732_v44  ;;  %v4627_v46 = vadd.f32 %v2757_v20, %v2756_v19  ;;  %v2735_v47 = vpop.f32.mrb[14].mxu0  ;;  %v2759_v52 = vpop.f32.mrb[14].mxu1  ;;  %1205 = vrot.lane.b32.xlu0 %v4621_v51, %s5145_s16 }
 0x320   : > { %v2736_v0 = vpop.f32.mrb[15].mxu0  ;;  %v2760_v1 = vpop.f32.mrb[15].mxu1 }
 0x321   : > { %v4631_v60 = vmul.f32 0.088388346, %v2734_v59  ;;  %v2737_v61 = vadd.f32 %v2736_v0, %v2735_v47  ;;  %v4633_v53 = vadd.f32 %v2760_v1, %v2759_v52  ;;  %1207 = vrot.lane.b32.xlu1 %v4625_v58, %s5145_s16 }
 0x323   : > { %v4637_v2 = vmul.f32 0.088388346, %v2737_v61  ;;  %1193 = vrot.lane.b32.xlu0 %v4631_v60, %s5145_s16 }
 0x325   : > { %v2778_v10 = vpop.f32.mrb[16].mxu1  ;;  %1195 = vrot.lane.b32.xlu1 %v4637_v2, %s5145_s16 }
 0x326   : > { %v2779_v54 = vpop.f32.mrb[17].mxu1 }
 0x327   : > { %v4643_v11 = vadd.f32 %v2779_v54, %v2778_v10  ;;  %v2781_v15 = vpop.f32.mrb[18].mxu1 }
 0x328   : > { %v2782_v16 = vpop.f32.mrb[19].mxu1 }
 0x329   : > { %v4645_v24 = vadd.f32 %v2782_v16, %v2781_v15  ;;  %1486 = vrot.lane.b32.xlu0 %v4643_v11, %s5145_s16 }
 0x32c   : > { %v2842_v62 = vpop.f32.mrb[16].mxu0 }
 0x32d   : > { %v2784_v25 = vpop.f32.mrb[20].mxu1  ;;  %1488 = vrot.lane.b32.xlu0 %v4645_v24, %s5145_s16  ;;  %v2843_v63 = vpop.f32.mrb[17].mxu0 }
 0x32e   : > { %v2785_v55 = vpop.f32.mrb[21].mxu1  ;;  %v2844_v31 = vadd.f32 %v2843_v63, %v2842_v62  ;;  %v2845_v4 = vpop.f32.mrb[18].mxu0 }
 0x32f   : > { %v4651_v56 = vadd.f32 %v2785_v55, %v2784_v25  ;;  %v2787_v57 = vpop.f32.mrb[22].mxu1  ;;  %v2846_v6 = vpop.f32.mrb[19].mxu0 }
 0x330   : > { %v2788_v28 = vpop.f32.mrb[23].mxu1  ;;  %v2847_v7 = vadd.f32 %v2846_v6, %v2845_v4 }
 0x331   : > { %v4653_v3 = vadd.f32 %v2788_v28, %v2787_v57  ;;  %1490 = vrot.lane.b32.xlu1 %v4651_v56, %s5145_s16 }
 0x332   : > { %v2640_v17 = vpack.c.bf16 %v2847_v7, %v2844_v31 }
 0x334   : > { %2641 = vst [vmem:[%s4236_s21] sm:$0xff] %v2640_v17   ;;  %v2848_v39 = vpop.f32.mrb[20].mxu0 }
 0x335   : > { %v2790_v9 = vpop.f32.mrb[24].mxu1  ;;  %1492 = vrot.lane.b32.xlu1 %v4653_v3, %s5145_s16  ;;  %v2849_v23 = vpop.f32.mrb[21].mxu0 }
 0x336   : > { %v2791_v12 = vpop.f32.mrb[25].mxu1  ;;  %v2850_v27 = vadd.f32 %v2849_v23, %v2848_v39  ;;  %v2851_v32 = vpop.f32.mrb[22].mxu0 }
 0x337   : > { %v4659_v21 = vadd.f32 %v2791_v12, %v2790_v9  ;;  %v2793_v38 = vpop.f32.mrb[26].mxu1  ;;  %v2852_v33 = vpop.f32.mrb[23].mxu0 }
 0x338   : > { %v2794_v22 = vpop.f32.mrb[27].mxu1  ;;  %v2853_v35 = vadd.f32 %v2852_v33, %v2851_v32 }
 0x339   : > { %v4662_v26 = vadd.f32 %v2794_v22, %v2793_v38  ;;  %1494 = vrot.lane.b32.xlu0 %v4659_v21, %s5145_s16 }
 0x33a   : > { %v2645_v37 = vpack.c.bf16 %v2853_v35, %v2850_v27 }
 0x33b   : > { %1496 = vrot.lane.b32.xlu1 %v4662_v26, %s5145_s16 }
 0x33c   : > { %2691 = vst [vmem:[%s4236_s21 + $0x8] sm:$0xff] %v2645_v37   ;;  %v2854_v14 = vpop.f32.mrb[24].mxu0 }
 0x33d   : > { %v2796_v36 = vpop.f32.mrb[28].mxu1  ;;  %v2855_v44 = vpop.f32.mrb[25].mxu0 }
 0x33e   : > { %v2797_v48 = vpop.f32.mrb[29].mxu1  ;;  %v2856_v45 = vadd.f32 %v2855_v44, %v2854_v14  ;;  %v2857_v20 = vpop.f32.mrb[26].mxu0 }
 0x33f   : > { %v4668_v42 = vadd.f32 %v2797_v48, %v2796_v36  ;;  %v2799_v49 = vpop.f32.mrb[30].mxu1  ;;  %v2858_v59 = vpop.f32.mrb[27].mxu0 }
 0x340   : > { %v2800_v18 = vpop.f32.mrb[31].mxu1  ;;  %v2859_v47 = vadd.f32 %v2858_v59, %v2857_v20 }
 0x341   : > { %v4671_v19 = vadd.f32 %v2800_v18, %v2799_v49  ;;  %1498 = vrot.lane.b32.xlu0 %v4668_v42, %s5145_s16 }
 0x342   : > { %v2650_v0 = vpack.c.bf16 %v2859_v47, %v2856_v45 }
 0x343   : > { %1500 = vrot.lane.b32.xlu1 %v4671_v19, %s5145_s16 }
 0x344   : > { %2692 = vst [vmem:[%s4236_s21 + $0x10] sm:$0xff] %v2650_v0   ;;  %v2860_v54 = vpop.f32.mrb[28].mxu0 }
 0x345   : > { %v2802_v52 = vpop.f32.mrb[32].mxu1  ;;  %v2861_v16 = vpop.f32.mrb[29].mxu0 }
 0x346   : > { %v2803_v1 = vpop.f32.mrb[33].mxu1  ;;  %v2862_v55 = vadd.f32 %v2861_v16, %v2860_v54  ;;  %v2863_v57 = vpop.f32.mrb[30].mxu0 }
 0x347   : > { %v4677_v61 = vadd.f32 %v2803_v1, %v2802_v52  ;;  %v2805_v10 = vpop.f32.mrb[34].mxu1  ;;  %v2864_v62 = vpop.f32.mrb[31].mxu0 }
 0x348   : > { %v2806_v15 = vpop.f32.mrb[35].mxu1  ;;  %v2865_v28 = vadd.f32 %v2864_v62, %v2863_v57 }
 0x349   : > { %v4680_v25 = vadd.f32 %v2806_v15, %v2805_v10  ;;  %1502 = vrot.lane.b32.xlu0 %v4677_v61, %s5145_s16 }
 0x34a   : > { %v2655_v31 = vpack.c.bf16 %v2865_v28, %v2862_v55 }
 0x34b   : > { %1504 = vrot.lane.b32.xlu1 %v4680_v25, %s5145_s16 }
 0x34c   : > { %2693 = vst [vmem:[%s4236_s21 + $0x18] sm:$0xff] %v2655_v31   ;;  %v2866_v9 = vpop.f32.mrb[32].mxu0 }
 0x34d   : > { %v2808_v63 = vpop.f32.mrb[36].mxu1  ;;  %v2867_v12 = vpop.f32.mrb[33].mxu0 }
 0x34e   : > { %v2809_v4 = vpop.f32.mrb[37].mxu1  ;;  %v2868_v39 = vadd.f32 %v2867_v12, %v2866_v9  ;;  %v2869_v22 = vpop.f32.mrb[34].mxu0 }
 0x34f   : > { %v4686_v6 = vadd.f32 %v2809_v4, %v2808_v63  ;;  %v2811_v7 = vpop.f32.mrb[38].mxu1  ;;  %v2870_v23 = vpop.f32.mrb[35].mxu0  ;;  %v4712_v63 = vmul.f32 0.088388346, %v4627_v46  ;;  %v4717_v4 = vmul.f32 0.088388346, %v4633_v53 }
 0x350   : > { %v2812_v17 = vpop.f32.mrb[39].mxu1  ;;  %v2871_v27 = vadd.f32 %v2870_v23, %v2869_v22  ;;  %v4726_v23 = vld [vmem:[%s4212_s10] sm:$0xff] }
 0x351   : > { %v4689_v38 = vadd.f32 %v2812_v17, %v2811_v7  ;;  %1506 = vrot.lane.b32.xlu0 %v4686_v6, %s5145_s16  ;;  %5246 = vst [vmem:[#allocation49_spill] sm:$0xff] %v4712_v63  ;;  %5247 = vst [vmem:[#allocation50_spill] sm:$0xff] %v4717_v4 }
 0x352   : > { %v2660_v33 = vpack.c.bf16 %v2871_v27, %v2868_v39  ;;  %v4729_v27 = vld [vmem:[%s4205_s15] sm:$0xff] }
 0x353   : > { %1508 = vrot.lane.b32.xlu1 %v4689_v38, %s5145_s16 }
 0x354   : > { %2694 = vst [vmem:[%s4236_s21 + $0x20] sm:$0xff] %v2660_v33   ;;  %v2872_v48 = vpop.f32.mrb[36].mxu0 }
 0x355   : > { %v2814_v32 = vpop.f32.mrb[40].mxu1  ;;  %v2873_v14 = vpop.f32.mrb[37].mxu0 }
 0x356   : > { %v2815_v35 = vpop.f32.mrb[41].mxu1  ;;  %v2874_v44 = vadd.f32 %v2873_v14, %v2872_v48  ;;  %v2875_v45 = vpop.f32.mrb[38].mxu0  ;;  %v1165_v14 = vmul.f32 %v4583_v29, %v4729_v27 }
 0x357   : > { %v4695_v36 = vadd.f32 %v2815_v35, %v2814_v32  ;;  %v2817_v37 = vpop.f32.mrb[42].mxu1  ;;  %v2876_v20 = vpop.f32.mrb[39].mxu0  ;;  %v4732_v32 = vld [vmem:[%s4205_s15 + $0x8] sm:$0xff] }
 0x358   : > { %v2818_v49 = vpop.f32.mrb[43].mxu1  ;;  %v2877_v59 = vadd.f32 %v2876_v20, %v2875_v45  ;;  %v4735_v35 = vld [vmem:[%s4212_s10 + $0x8] sm:$0xff]  ;;  %v4747_v20 = vld [vmem:[%s4205_s15 + $0x40] sm:$0xff] }
 0x359   : > { %v4698_v18 = vadd.f32 %v2818_v49, %v2817_v37  ;;  %1510 = vrot.lane.b32.xlu0 %v4695_v36, %s5145_s16  ;;  %v4739_v49 = vld [vmem:[%s4212_s10 + $0x40] sm:$0xff] }
 0x35a   : > { %v2665_v52 = vpack.c.bf16 %v2877_v59, %v2874_v44  ;;  %v1166_v44 = vmul.f32 %v4585_v5, %v4732_v32  ;;  %v4750_v59 = vld [vmem:[%s4205_s15 + $0x48] sm:$0xff]  ;;  %v1173_v5 = vmul.f32 %v4589_v30, %v4747_v20 }
 0x35b   : > { %1512 = vrot.lane.b32.xlu1 %v4698_v18, %s5145_s16 }
 0x35c   : > { %2695 = vst [vmem:[%s4236_s21 + $0x28] sm:$0xff] %v2665_v52   ;;  %v2878_v54 = vpop.f32.mrb[40].mxu0  ;;  %v4753_v52 = vld [vmem:[%s4212_s10 + $0x48] sm:$0xff] }
 0x35d   : > { %v2820_v47 = vpop.f32.mrb[44].mxu1  ;;  %v2879_v16 = vpop.f32.mrb[41].mxu0 }
 0x35e   : > { %v2821_v0 = vpop.f32.mrb[45].mxu1  ;;  %v2880_v57 = vadd.f32 %v2879_v16, %v2878_v54  ;;  %v2881_v62 = vpop.f32.mrb[42].mxu0  ;;  %v1174_v16 = vmul.f32 %v4593_v8, %v4750_v59 }
 0x35f   : > { %v4704_v1 = vadd.f32 %v2821_v0, %v2820_v47  ;;  %v2823_v10 = vpop.f32.mrb[46].mxu1  ;;  %v2882_v28 = vpop.f32.mrb[43].mxu0 }
 0x360   : > { %v2824_v15 = vpop.f32.mrb[47].mxu1  ;;  %v2883_v31 = vadd.f32 %v2882_v28, %v2881_v62  ;;  %v4765_v28 = vld [vmem:[%s4205_s15 + $0x10] sm:$0xff] }
 0x361   : > { %v4707_v55 = vadd.f32 %v2824_v15, %v2823_v10  ;;  %1514 = vrot.lane.b32.xlu0 %v4704_v1, %s5145_s16  ;;  %v4757_v15 = vld [vmem:[%s4212_s10 + $0x10] sm:$0xff] }
 0x362   : > { %v2670_v7 = vpack.c.bf16 %v2883_v31, %v2880_v57  ;;  %v4768_v31 = vld [vmem:[%s4205_s15 + $0x18] sm:$0xff] }
 0x363   : > { %5245 = vst [vmem:[#allocation48_spill] sm:$0xff] %v4707_v55  ;;  %1516 = vrot.lane.b32.xlu1 %v4707_v55, %s5145_s16 }
 0x364   : > { %2696 = vst [vmem:[%s4236_s21 + $0x30] sm:$0xff] %v2670_v7   ;;  %v2884_v46 = vpop.f32.mrb[44].mxu0 }
 0x365   : > { %1209 = vrot.lane.b32.xlu0 %v4712_v63, %s5145_s16  ;;  %v2885_v9 = vpop.f32.mrb[45].mxu0 }
 0x366   : > { %v2886_v17 = vadd.f32 %v2885_v9, %v2884_v46  ;;  %v2887_v12 = vpop.f32.mrb[46].mxu0  ;;  %v4771_v46 = vld [vmem:[%s4212_s10 + $0x18] sm:$0xff] }
 0x367   : > { %1211 = vrot.lane.b32.xlu1 %v4717_v4, %s5145_s16  ;;  %v2888_v39 = vpop.f32.mrb[47].mxu0  ;;  %s2021_s16 = scalar_lea.sflag [#allocation16], %s4201_s12 }
 0x368   : > { %v2889_v22 = vadd.f32 %v2888_v39, %v2887_v12  ;;  %v4776_v12 = vld [vmem:[%s4212_s10 + $0x50] sm:$0xff]  ;;  %v1167_v39 = vmul.f32 %v4597_v13, %v4765_v28 }
 0x36a   : > { %v2675_v53 = vpack.c.bf16 %v2889_v22, %v2886_v17  ;;  %v1168_v22 = vmul.f32 %v4601_v40, %v4768_v31 }
 0x36c   : > { %2697 = vst [vmem:[%s4236_s21 + $0x38] sm:$0xff] %v2675_v53  }
 0x37d   : > { %v1182_v33 = vpop.permute.xlu0 %1181 }
 0x37e   : > { %v1213_v37 = vmul.f32 %v1182_v33, %v4726_v23 }
 0x37f   : > { %v1184_v48 = vpop.permute.xlu1 %1183 }
 0x380   : > { %v1214_v45 = vmul.f32 %v1184_v48, %v4735_v35  ;;  %v1229_v0 = vadd.f32 %v1213_v37, %v1165_v14  ;;  %v4784_v37 = vld [vmem:[%s4205_s15 + $0x50] sm:$0xff]  ;;  %v4787_v48 = vld [vmem:[%s4205_s15 + $0x58] sm:$0xff] }
 0x381   : > { %v1198_v47 = vpop.permute.xlu0 %1197 }
 0x382   : > { %v1230_v10 = vadd.f32 %v1214_v45, %v1166_v44  ;;  %v1221_v29 = vmul.f32 %v1198_v47, %v4739_v49  ;;  %v4790_v44 = vld [vmem:[%s4212_s10 + $0x58] sm:$0xff] }
 0x383   : > { %v1200_v54 = vpop.permute.xlu1 %1199 }
 0x384   : > { %v2560_v57 = vpack.c.bf16 %v1230_v10, %v1229_v0  ;;  %v1222_v62 = vmul.f32 %v1200_v54, %v4753_v52  ;;  %v1237_v9 = vadd.f32 %v1221_v29, %v1173_v5  ;;  %v4795_v0 = vld [vmem:[%s4212_s10 + $0x20] sm:$0xff]  ;;  %v1175_v10 = vmul.f32 %v4605_v41, %v4784_v37 }
 0x385   : > { %v1186_v7 = vpop.permute.xlu0 %1185  ;;  %v1176_v29 = vmul.f32 %v4609_v34, %v4787_v48 }
 0x386   : > { %2561 = vst [vmem:[%s4232_s3] sm:$0xff] %v2560_v57   ;;  %v1238_v30 = vadd.f32 %v1222_v62, %v1174_v16  ;;  %v1215_v17 = vmul.f32 %v1186_v7, %v4757_v15  ;;  %v4803_v16 = vld [vmem:[%s4205_s15 + $0x20] sm:$0xff]  ;;  %v4806_v57 = vld [vmem:[%s4205_s15 + $0x28] sm:$0xff] }
 0x387   : > { %v1188_v8 = vpop.permute.xlu1 %1187  ;;  %v4809_v7 = vld [vmem:[%s4212_s10 + $0x28] sm:$0xff] }
 0x388   : > { %v2580_v53 = vpack.c.bf16 %v1238_v30, %v1237_v9  ;;  %v1216_v33 = vmul.f32 %v1188_v8, %v4771_v46  ;;  %v1231_v45 = vadd.f32 %v1215_v17, %v1167_v39  ;;  %v4814_v17 = vld [vmem:[%s4212_s10 + $0x60] sm:$0xff]  ;;  %v1169_v8 = vmul.f32 %v4613_v43, %v4803_v16 }
 0x389   : > { %v1202_v14 = vpop.permute.xlu0 %1201  ;;  %v1170_v39 = vmul.f32 %v4617_v50, %v4806_v57 }
 0x38a   : > { %2680 = vst [vmem:[%s4232_s3 + $0x20] sm:$0xff] %v2580_v53   ;;  %v1232_v13 = vadd.f32 %v1216_v33, %v1168_v22  ;;  %v1223_v47 = vmul.f32 %v1202_v14, %v4776_v12  ;;  %v4822_v33 = vld [vmem:[%s4205_s15 + $0x60] sm:$0xff]  ;;  %v4825_v14 = vld [vmem:[%s4205_s15 + $0x68] sm:$0xff] }
 0x38b   : > { %v1204_v40 = vpop.permute.xlu1 %1203 }
 0x38c   : > { %v2565_v54 = vpack.c.bf16 %v1232_v13, %v1231_v45  ;;  %v1224_v5 = vmul.f32 %v1204_v40, %v4790_v44  ;;  %v1239_v9 = vadd.f32 %v1223_v47, %v1175_v10  ;;  %v4828_v13 = vld [vmem:[%s4212_s10 + $0x68] sm:$0xff]  ;;  %v914_v10 = vld [vmem:[%s4212_s10 + $0x30] sm:$0xff] }
 0x38d   : > { %v1190_v62 = vpop.permute.xlu0 %1189 }
 0x38e   : > { %2677 = vst [vmem:[%s4232_s3 + $0x8] sm:$0xff] %v2565_v54   ;;  %v1240_v41 = vadd.f32 %v1224_v5, %v1176_v29  ;;  %v1217_v30 = vmul.f32 %v1190_v62, %v4795_v0  ;;  %v1177_v29 = vmul.f32 %v4621_v51, %v4822_v33  ;;  %v1178_v54 = vmul.f32 %v4625_v58, %v4825_v14 }
 0x38f   : > { %v1192_v34 = vpop.permute.xlu1 %1191 }
 0x390   : > { %v2585_v22 = vpack.c.bf16 %v1240_v41, %v1239_v9  ;;  %v1218_v53 = vmul.f32 %v1192_v34, %v4809_v7  ;;  %v1233_v47 = vadd.f32 %v1217_v30, %v1169_v8  ;;  %v898_v9 = vld [vmem:[%s4205_s15 + $0x30] sm:$0xff]  ;;  %v899_v41 = vld [vmem:[%s4205_s15 + $0x38] sm:$0xff] }
 0x391   : > { %v1206_v45 = vpop.permute.xlu0 %1205  ;;  %v915_v30 = vld [vmem:[%s4212_s10 + $0x38] sm:$0xff]  ;;  %v1172_v51 = vmul.f32 %v4637_v2, %v899_v41 }
 0x392   : > { %2681 = vst [vmem:[%s4232_s3 + $0x28] sm:$0xff] %v2585_v22   ;;  %v1234_v43 = vadd.f32 %v1218_v53, %v1170_v39  ;;  %v1225_v40 = vmul.f32 %v1206_v45, %v4814_v17  ;;  %v1171_v45 = vmul.f32 %v4631_v60, %v898_v9  ;;  %v1471_v60 = vmul.f32 %v4645_v24, %v4732_v32 }
 0x393   : > { %v1208_v50 = vpop.permute.xlu1 %1207 }
 0x394   : > { %v2570_v5 = vpack.c.bf16 %v1234_v43, %v1233_v47  ;;  %v1226_v62 = vmul.f32 %v1208_v50, %v4828_v13  ;;  %v1241_v8 = vadd.f32 %v1225_v40, %v1177_v29  ;;  %v1470_v40 = vmul.f32 %v4643_v11, %v4729_v27 }
 0x395   : > { %v1194_v34 = vpop.permute.xlu0 %1193  ;;  %v1473_v11 = vmul.f32 %v4653_v3, %v4768_v31 }
 0x396   : > { %2678 = vst [vmem:[%s4232_s3 + $0x10] sm:$0xff] %v2570_v5   ;;  %v1242_v39 = vadd.f32 %v1226_v62, %v1178_v54  ;;  %v1219_v22 = vmul.f32 %v1194_v34, %v914_v10 }
 0x397   : > { %v1196_v53 = vpop.permute.xlu1 %1195 }
 0x398   : > { %v2590_v4 = vpack.c.bf16 %v1242_v39, %v1241_v8  ;;  %v1220_v58 = vmul.f32 %v1196_v53, %v915_v30  ;;  %v1235_v47 = vadd.f32 %v1219_v22, %v1171_v45  ;;  %v1475_v22 = vmul.f32 %v4662_v26, %v4806_v57 }
 0x39a   : > { %2682 = vst [vmem:[%s4232_s3 + $0x30] sm:$0xff] %v2590_v4   ;;  %v1236_v43 = vadd.f32 %v1220_v58, %v1172_v51  ;;  %v1477_v51 = vmul.f32 %v4671_v19, %v899_v41 }
 0x39b   : > { %v1487_v50 = vpop.permute.xlu0 %1486 }
 0x39c   : > { %v2575_v63 = vpack.c.bf16 %v1236_v43, %v1235_v47  ;;  %v1518_v55 = vmul.f32 %v1487_v50, %v4726_v23  ;;  %v1472_v23 = vmul.f32 %v4651_v56, %v4765_v28  ;;  %v1478_v43 = vmul.f32 %v4677_v61, %v4747_v20 }
 0x39d   : > { %v1481_v61 = vmul.f32 %v4689_v38, %v4787_v48  ;;  %v1483_v38 = vmul.f32 %v4698_v18, %v4825_v14  ;;  %v5251_v14 = vld [vmem:[#allocation48_spill] sm:$0xff] }
 0x39e   : > { %2679 = vst [vmem:[%s4232_s3 + $0x18] sm:$0xff] %v2575_v63   ;;  %v1534_v29 = vadd.f32 %v1518_v55, %v1470_v40 }
 0x39f   : > { %v1489_v5 = vpop.permute.xlu0 %1488 }
 0x3a0   : > { %v1519_v2 = vmul.f32 %v1489_v5, %v4735_v35  ;;  %v1480_v5 = vmul.f32 %v4686_v6, %v4784_v37  ;;  %v1482_v6 = vmul.f32 %v4695_v36, %v4822_v33  ;;  %v906_v36 = vld [vmem:[%s4205_s15 + $0x70] sm:$0xff]  ;;  %v907_v33 = vld [vmem:[%s4205_s15 + $0x78] sm:$0xff]  ;;  %s4905_s15 = scalar_lea.hbm %s5252_s22, %s2495_s1  ;;  %s4923_s22 = scalar_lea.hbm %s5258_s17, %s2495_s1 }
 0x3a1   : > { %v1484_v18 = vmul.f32 %v4704_v1, %v906_v36  ;;  %v5254_v1 = vld [vmem:[#allocation49_spill] sm:$0xff] }
 0x3a2   : > { %v1535_v54 = vadd.f32 %v1519_v2, %v1471_v60 }
 0x3a3   : > { %v1491_v62 = vpop.permute.xlu1 %1490 }
 0x3a4   : > { %v2600_v4 = vpack.c.bf16 %v1535_v54, %v1534_v29  ;;  %v1520_v34 = vmul.f32 %v1491_v62, %v4757_v15  ;;  %v1474_v15 = vmul.f32 %v4659_v21, %v4803_v16  ;;  %v923_v54 = vld [vmem:[%s4212_s10 + $0x78] sm:$0xff] }
 0x3a6   : > { %2601 = vst [vmem:[%s4234_s4] sm:$0xff] %v2600_v4   ;;  %v1536_v27 = vadd.f32 %v1520_v34, %v1472_v23 }
 0x3a7   : > { %v1493_v63 = vpop.permute.xlu1 %1492 }
 0x3a8   : > { %v1521_v24 = vmul.f32 %v1493_v63, %v4771_v46 }
 0x3aa   : > { %v1537_v32 = vadd.f32 %v1521_v24, %v1473_v11 }
 0x3ab   : > { %v1495_v55 = vpop.permute.xlu0 %1494 }
 0x3ac   : > { %v2605_v35 = vpack.c.bf16 %v1537_v32, %v1536_v27  ;;  %v1522_v8 = vmul.f32 %v1495_v55, %v4795_v0  ;;  %v1476_v0 = vmul.f32 %v4668_v42, %v898_v9  ;;  %v1179_v32 = vmul.f32 %v5254_v1, %v906_v36  ;;  %v5255_v55 = vld [vmem:[#allocation50_spill] sm:$0xff] }
 0x3ad   : > { %v1497_v39 = vpop.permute.xlu1 %1496 }
 0x3ae   : > { %2684 = vst [vmem:[%s4234_s4 + $0x8] sm:$0xff] %v2605_v35   ;;  %v1523_v56 = vmul.f32 %v1497_v39, %v4809_v7  ;;  %v1538_v3 = vadd.f32 %v1522_v8, %v1474_v15  ;;  %v1180_v35 = vmul.f32 %v5255_v55, %v907_v33 }
 0x3b0   : > { %v1539_v28 = vadd.f32 %v1523_v56, %v1475_v22 }
 0x3b2   : > { %v2610_v31 = vpack.c.bf16 %v1539_v28, %v1538_v3 }
 0x3b3   : > { %v1499_v46 = vpop.permute.xlu0 %1498 }
 0x3b4   : > { %2685 = vst [vmem:[%s4234_s4 + $0x10] sm:$0xff] %v2610_v31   ;;  %v1524_v53 = vmul.f32 %v1499_v46, %v914_v10  ;;  %v1479_v10 = vmul.f32 %v4680_v25, %v4750_v59 }
 0x3b5   : > { %v1501_v45 = vpop.permute.xlu1 %1500 }
 0x3b6   : > { %v1525_v21 = vmul.f32 %v1501_v45, %v915_v30  ;;  %v1540_v16 = vadd.f32 %v1524_v53, %v1476_v0 }
 0x3b8   : > { %v1541_v58 = vadd.f32 %v1525_v21, %v1477_v51 }
 0x3ba   : > { %v2615_v26 = vpack.c.bf16 %v1541_v58, %v1540_v16 }
 0x3bb   : > { %v1503_v57 = vpop.permute.xlu0 %1502 }
 0x3bc   : > { %2686 = vst [vmem:[%s4234_s4 + $0x18] sm:$0xff] %v2615_v26   ;;  %v1526_v7 = vmul.f32 %v1503_v57, %v4739_v49 }
 0x3bd   : > { %v1505_v47 = vpop.permute.xlu1 %1504 }
 0x3be   : > { %v1527_v42 = vmul.f32 %v1505_v47, %v4753_v52  ;;  %v1542_v19 = vadd.f32 %v1526_v7, %v1478_v43 }
 0x3c0   : > { %v1543_v9 = vadd.f32 %v1527_v42, %v1479_v10 }
 0x3c2   : > { %v2620_v41 = vpack.c.bf16 %v1543_v9, %v1542_v19 }
 0x3c3   : > { %v1507_v30 = vpop.permute.xlu0 %1506 }
 0x3c4   : > { %2687 = vst [vmem:[%s4234_s4 + $0x20] sm:$0xff] %v2620_v41   ;;  %v1528_v50 = vmul.f32 %v1507_v30, %v4776_v12 }
 0x3c5   : > { %v1509_v49 = vpop.permute.xlu1 %1508 }
 0x3c6   : > { %v1529_v25 = vmul.f32 %v1509_v49, %v4790_v44  ;;  %v1544_v20 = vadd.f32 %v1528_v50, %v1480_v5 }
 0x3c8   : > { %v1545_v59 = vadd.f32 %v1529_v25, %v1481_v61 }
 0x3ca   : > { %v2625_v52 = vpack.c.bf16 %v1545_v59, %v1544_v20 }
 0x3cb   : > { %v1511_v40 = vpop.permute.xlu0 %1510 }
 0x3cc   : > { %2688 = vst [vmem:[%s4234_s4 + $0x28] sm:$0xff] %v2625_v52   ;;  %v1530_v60 = vmul.f32 %v1511_v40, %v4814_v17  ;;  %v922_v17 = vld [vmem:[%s4212_s10 + $0x70] sm:$0xff]  ;;  %s2083_s10 = sshll.u32 %s4236_s21, 4  ;;  %s5256_s21 = sld [smem:[#allocation60_spill]]  ;;  %s4917_s10 = int_to_ptr.vmem [resolvable:$true] %s2083_s10 }
 0x3cd   : > { %v1513_v12 = vpop.permute.xlu1 %1512 }
 0x3ce   : > { %v1531_v37 = vmul.f32 %v1513_v12, %v4828_v13  ;;  %v1546_v48 = vadd.f32 %v1530_v60, %v1482_v6  ;;  %v1485_v13 = vmul.f32 %v5251_v14, %v907_v33 }
 0x3d0   : > { %v1547_v44 = vadd.f32 %v1531_v37, %v1483_v38 }
 0x3d2   : > { %v2630_v2 = vpack.c.bf16 %v1547_v44, %v1546_v48  ;;  %s5257_s9 = smov %s5256_s21  ;;  %s4915_s24 = scalar_lea.hbm %s5256_s21, %s2495_s1 }
 0x3d3   : > { %v1515_v29 = vpop.permute.xlu0 %1514  ;;  %s3381_s21 = scalar_lea.vmem %s3380_s5, 2048 }
 0x3d4   : > { %2689 = vst [vmem:[%s4234_s4 + $0x30] sm:$0xff] %v2630_v2   ;;  %v1532_v62 = vmul.f32 %v1515_v29, %v922_v17  ;;  %p3383_p6 = scmp.lt.s32.totalorder %s3381_s21, %s3375_s0 }
 0x3d5   : > { %v1517_v4 = vpop.permute.xlu1 %1516 }
 0x3d6   : > { %v1533_v34 = vmul.f32 %v1517_v4, %v923_v54  ;;  %v1548_v23 = vadd.f32 %v1532_v62, %v1484_v18  ;;  %p3384_p3 = por %p3383_p6, %p3382_p4 }
 0x3d7   : > { %v1210_v63 = vpop.permute.xlu0 %1209 }
 0x3d8   : > { %v1549_v11 = vadd.f32 %v1533_v34, %v1485_v13  ;;  %v1227_v24 = vmul.f32 %v1210_v63, %v922_v17  ;;  %p3385_p8 = pnand %p3384_p3, %p3378_p11 }
 0x3d9   : > { %v1212_v27 = vpop.permute.xlu1 %1211 }
 0x3da   : > { %v2635_v8 = vpack.c.bf16 %v1549_v11, %v1548_v23  ;;  %v1228_v39 = vmul.f32 %v1212_v27, %v923_v54  ;;  %v1243_v15 = vadd.f32 %v1227_v24, %v1179_v32 }
 0x3dc   : > { %2690 = vst [vmem:[%s4234_s4 + $0x38] sm:$0xff] %v2635_v8   ;;  %v1244_v22 = vadd.f32 %v1228_v39, %v1180_v35 }
 0x3dd   : > { %3388 = shalt.err (!%p3385_p8)
}
 0x3de   : > { %s3389_s4 = scalar_lea.hbm %s4905_s15, 1024  ;;  %s3393_s26 = scalar_lea.hbm %s5253_s28, 8192 }
 0x3df   : > { %p3390_p2 = scmp.ne.s32.totalorder %s4905_s15, %s3389_s4  ;;  %p3394_p0 = scmp.lt.u32.totalorder %s4905_s15, %s5253_s28 }
 0x3e0   : > { %p3395_p12 = scmp.lt.u32.totalorder %s3393_s26, %s3389_s4  ;;  %p3397_p13 = scmp.lt.u32.totalorder %s3389_s4, %s4905_s15 }
 0x3e1   : > { %p3391_p9 = pnand %p3390_p2, %p5260_p5 }
 0x3e2   : > { %p3396_p1 = por %p3395_p12, %p3394_p0 }
 0x3e3   : > { %p3392_p10 = pneg %p3391_p9 }
 0x3e4   : > { %p3398_p7 = por %p3397_p13, %p3396_p1 }
 0x3e6   : > { %p3399_p11 = pnand %p3398_p7, %p3392_p10 }
 0x3e8   : > { %3402 = shalt.err (!%p3399_p11)
}
 0x3e9   : > { %s3649_s0 = smov 4   ;;  %s5261_s5 = smov 64   ;;  %v2595_v56 = vpack.c.bf16 %v1244_v22, %v1243_v15 }
 0x3ea   : > { %2919 = dma.vmem_to_hbm [thread:$0]  (%p5260_p5), %s4910_s13, 1024, %s4905_s15, %s2021_s16, %s5261_s5, %s5261_s5, %s3649_s0  }
 0x3eb   : > { %s3403_s21 = scalar_lea.vmem %s4917_s10, 1024  ;;  %s3650_s4 = smov [#allocation17]  }
 0x3ec   : > { %p3404_p4 = scmp.ne.s32.totalorder %s4917_s10, %s3403_s21  ;;  %s3407_s1 = sshll.u32 %s3650_s4, 4  ;;  %s3408_s1 = int_to_ptr.vmem [resolvable:$false] %s3407_s1 }
 0x3ed   : > { %s3409_s7 = scalar_lea.vmem %s3408_s1, 2048  ;;  %p3410_p8 = scmp.lt.s32.totalorder %s4917_s10, %s3408_s1 }
 0x3ee   : > { %p3405_p6 = pnand %p3404_p4, %p5260_p5  ;;  %p3411_p2 = scmp.lt.s32.totalorder %s3409_s7, %s3403_s21 }
 0x3f0   : > { %p3406_p3 = pneg %p3405_p6  ;;  %p3412_p9 = por %p3411_p2, %p3410_p8 }
 0x3f2   : > { %p3413_p10 = pnand %p3412_p9, %p3406_p3 }
 0x3f4   : > { %3416 = shalt.err (!%p3413_p10)
}
 0x3f5   : > { %s3417_s13 = scalar_lea.hbm %s4915_s24, 1024  ;;  %s3421_s17 = scalar_lea.hbm %s5257_s9, 8192 }
 0x3f6   : > { %p3418_p0 = scmp.ne.s32.totalorder %s4915_s24, %s3417_s13  ;;  %p3422_p13 = scmp.lt.u32.totalorder %s4915_s24, %s5257_s9 }
 0x3f7   : > { %p3423_p7 = scmp.lt.u32.totalorder %s3421_s17, %s3417_s13  ;;  %p3425_p4 = scmp.lt.u32.totalorder %s3417_s13, %s4915_s24 }
 0x3f8   : > { %p3419_p12 = pnand %p3418_p0, %p5260_p5 }
 0x3f9   : > { %p3424_p11 = por %p3423_p7, %p3422_p13 }
 0x3fa   : > { %p3420_p1 = pneg %p3419_p12 }
 0x3fb   : > { %p3426_p6 = por %p3425_p4, %p3424_p11 }
 0x3fd   : > { %p3427_p3 = pnand %p3426_p6, %p3420_p1 }
 0x3ff   : > { %3430 = shalt.err (!%p3427_p3)
}
 0x400   : > { %s5262_s21 = sld [smem:[#allocation25_spill]]  ;;  %2683 = vst [vmem:[%s4232_s3 + $0x38] sm:$0xff] %v2595_v56   ;;  %s3431_s13 = scalar_lea.vmem %s4925_s30, 1024 }
 0x401   : > { %2920 = dma.vmem_to_hbm [thread:$0]  (%p5260_p5), %s4917_s10, 1024, %s4915_s24, %s2021_s16, %s5261_s5, %s5261_s5, %s3649_s0  }
 0x402   : > { %p3432_p8 = scmp.ne.s32.totalorder %s4925_s30, %s3431_s13  ;;  %s3651_s15 = smov [#allocation14]  }
 0x403   : > { %s3435_s12 = sshll.u32 %s3651_s15, 4  ;;  %s3436_s12 = int_to_ptr.vmem [resolvable:$false] %s3435_s12 }
 0x404   : > { %p3433_p2 = pnand %p3432_p8, %p5260_p5  ;;  %s3437_s26 = scalar_lea.vmem %s3436_s12, 2048 }
 0x405   : > { %p3438_p10 = scmp.lt.s32.totalorder %s4925_s30, %s3436_s12  ;;  %p3439_p0 = scmp.lt.s32.totalorder %s3437_s26, %s3431_s13 }
 0x406   : > { %s5263_s1 = sand.u32 1, %s5262_s21   ;;  %p3434_p9 = pneg %p3433_p2 }
 0x407   : > { %s4983_s7 = scalar_lea.sflag [#allocation5], %s5263_s1  ;;  %p3440_p12 = por %p3439_p0, %p3438_p10 }
 0x409   : > { %p3441_p1 = pnand %p3440_p12, %p3434_p9 }
 0x40b   : > { %3444 = shalt.err (!%p3441_p1)
}
 0x40c   : > { %s3445_s3 = scalar_lea.hbm %s4923_s22, 1024  ;;  %s3449_s24 = scalar_lea.hbm %s5259_s18, 8192 }
 0x40d   : > { %p3446_p13 = scmp.ne.s32.totalorder %s4923_s22, %s3445_s3  ;;  %p3450_p4 = scmp.lt.u32.totalorder %s4923_s22, %s5259_s18 }
 0x40e   : > { %p3451_p6 = scmp.lt.u32.totalorder %s3449_s24, %s3445_s3  ;;  %p3453_p8 = scmp.lt.u32.totalorder %s3445_s3, %s4923_s22 }
 0x40f   : > { %p3447_p7 = pnand %p3446_p13, %p5260_p5 }
 0x410   : > { %p3452_p3 = por %p3451_p6, %p3450_p4 }
 0x411   : > { %p3448_p11 = pneg %p3447_p7 }
 0x412   : > { %p3454_p2 = por %p3453_p8, %p3452_p3 }
 0x414   : > { %p3455_p9 = pnand %p3454_p2, %p3448_p11 }
 0x416   : > { %3458 = shalt.err (!%p3455_p9)
}
 0x417   : > { %2918 = dma.vmem_to_hbm [thread:$0]  (%p5260_p5), %s4925_s30, 1024, %s4923_s22, %s4983_s7, %s5261_s5, %s5261_s5, %s3649_s0  }
 0x418 PF: > { %s5264_s4 = sld [smem:[#allocation24_spill]]  ;;  %p2954_p10 = scmp.ge.s32.totalorder %s3633_s27, 2 }
 0x419   : > { %p5265_p0 = scmp.ne.s32.totalorder %s5211_s29, 0 }
 0x41b   : > { %p2944_p12 = pnand %p2954_p10, %p5265_p0 }
 0x41e   : > { %s2098_s21 = sand.u32 1, %s5264_s4  }
 0x41f   : > { %s2099_s1 = scalar_lea.sflag [#allocation5], %s2098_s21 }
 0x420   : > { %3552 = dma.done.wait (!%p2944_p12), %s2099_s1, 1024  }
 0x421   : > { %3554 = vsyncadd (!%p2944_p12), %s2099_s1, 4294966272  ;;  %s5266_s23 = sadd.s32 4294967294, %s3633_s27  }
 0x422   : > { %s2107_s13 = sand.u32 1, %s5266_s23  }
 0x423   : > { %s2108_s15 = scalar_lea.sflag [#allocation16], %s2107_s13 }
 0x424   : > { %3556 = dma.done.wait (!%p2944_p12), %s2108_s15, 2048  }
 0x425   : > { %3558 = vsyncadd (!%p2944_p12), %s2108_s15, 4294965248  ;;  %s38_s27 = sadd.s32 1, %s3633_s27   ;;  %s5269_s30 = sld [smem:[#allocation25_spill]] }
 0x426   : > { %p5017_p5 = scmp.ge.s32.totalorder %s38_s27, 10   ;;  %s5270_s12 = sld [smem:[#allocation26_spill]] }
 0x427   : > { %s5271_s29 = sld [smem:[#allocation43_spill]]  ;;  %s5272_s15 = sld [smem:[#allocation27_spill]] }
 0x428   : > { %s5273_s16 = sld [smem:[#allocation28_spill]]  ;;  %s5274_s17 = sld [smem:[#allocation44_spill]] }
 0x429   : > { %s5275_s0 = sld [smem:[#allocation47_spill]]  ;;  %s5276_s21 = sld [smem:[#allocation32_spill]] }
 0x42a   : > { %s5277_s23 = sld [smem:[#allocation33_spill]]  ;;  %s5278_s24 = sld [smem:[#allocation40_spill]] }
 0x42b   : > { %s5279_s5 = sld [smem:[#allocation42_spill]]  ;;  %s5280_s10 = smov %s3569_s11 }
 0x42c   : > { %s5281_s26 = sld [smem:[#allocation45_spill]]  ;;  %s5282_s11 = smov %s4038_s8 }
 0x42d   : > { %s5284_s13 = smov %s3581_s14  ;;  %s5285_s14 = smov %s5271_s29 }
 0x42e   : > { %5286 = sst [smem:[#allocation24_spill]] %s3601_s19  ;;  %s5287_s19 = smov %s3605_s20 }
 0x42f   : > { %s5288_s20 = smov %s5275_s0  ;;  %s5289_s22 = smov %s3625_s25 }
 0x430   :  { %37 = sbr.rel (!%p5017_p5) target bundleno = 32 (0x20), region = 190 }
 0x431   : > { %s5290_s25 = smov %s5279_s5 }
 0x437   :  { %2122 = vsyncpa [#allocation4], 1 }
 0x438   :  { %2124 = vsyncpa [#allocation4 + $0x1], 1 }
 0x439   :  { %2125 = vsyncpa [#allocation7], 1 }
 0x43a   :  { %2127 = vsyncpa [#allocation7 + $0x1], 1 }
 0x43b   :  { %2128 = vsyncpa [#allocation10], 1 }
 0x43c   :  { %2130 = vsyncpa [#allocation10 + $0x1], 1 }
 0x43d   :  { %2131 = vsyncpa [#allocation13], 1 }
 0x43e   :  { %2133 = vsyncpa [#allocation13 + $0x1], 1 }
 0x43f   :  { %2134 = vsyncpa [#allocation5], 1 }
 0x440   :  { %2136 = vsyncpa [#allocation5 + $0x1], 1 }
 0x441   :  { %2137 = vsyncpa [#allocation16], 1 }
 0x442   :  { %2139 = vsyncpa [#allocation16 + $0x1], 1 }

</bundles_post_ra>
